<compile_context>
chip_gen: v6e
topology: v6e:2x2x1
jax: 0.10.0
libtpu: 0.0.40
codegen_flags: <defaults>
</compile_context>

<pallas_src>
import functools

import numpy as np
import jax
import jax.numpy as jnp
from jax import lax
from jax.experimental import pallas as pl
from jax.experimental.pallas import tpu as pltpu

_SEARCHSORTED_EPS = 1e-6   # used by the pure-JAX reference only
_LANES = 256               # lane width of the dense 2D element view


def _rqs_fwd_kernel(x_ref, w_ref, h_ref, d_ref, out_ref, lad_ref, *,
                    num_bins, row_block, n_chunks, tail_bound,
                    min_bin_width, min_bin_height, min_derivative, d_boundary):
    K = num_bins
    left = -tail_bound
    right = tail_bound
    bottom = -tail_bound
    top = tail_bound
    span = right - left
    w_floor = span * min_bin_width
    h_floor = span * min_bin_height
    w_coeff = span * (1.0 - min_bin_width * K)
    h_coeff = span * (1.0 - min_bin_height * K)

    def _softplus(v):
        return jnp.maximum(v, 0.0) + jnp.log(1.0 + jnp.exp(-jnp.abs(v)))

    def process(rows):
        x = x_ref[rows, :]                               # (row_block, C)
        inside = jnp.logical_and(x >= left, x <= right)
        xc = jnp.clip(x, left, right)

        # --- stable softmax statistics over the K bins (unrolled, K static) ---
        wmax = w_ref[0, rows, :]
        hmax = h_ref[0, rows, :]
        for k in range(1, K):
            wmax = jnp.maximum(wmax, w_ref[k, rows, :])
            hmax = jnp.maximum(hmax, h_ref[k, rows, :])
        wsum = jnp.exp(w_ref[0, rows, :] - wmax)
        hsum = jnp.exp(h_ref[0, rows, :] - hmax)
        for k in range(1, K):
            wsum = wsum + jnp.exp(w_ref[k, rows, :] - wmax)
            hsum = hsum + jnp.exp(h_ref[k, rows, :] - hmax)
        # one exact reciprocal each, reused for all K bins
        w_scale = w_coeff / wsum
        h_scale = h_coeff / hsum

        # --- widths: streaming prefix edges + searchsorted + one-hot gather ---
        zeros = jnp.zeros_like(xc)
        bidx = jnp.zeros(xc.shape, jnp.int32)
        in_cw = zeros                                    # lower edge of selected bin
        in_bw = zeros                                    # width of selected bin
        lo = left                                        # python float; array after k=0
        prev_ge = None
        for k in range(K):
            wk = w_floor + w_scale * jnp.exp(w_ref[k, rows, :] - wmax)   # width (x units)
            if k < K - 1:
                hi = lo + wk
                ge = xc >= hi
                not_ge = jnp.logical_not(ge)
                sel = not_ge if k == 0 else jnp.logical_and(prev_ge, not_ge)
                bidx = bidx + jnp.where(ge, 1, 0)
                prev_ge = ge
            else:
                hi = right                               # exact right edge (reference forcing)
                sel = prev_ge if prev_ge is not None else jnp.ones(xc.shape, jnp.bool_)
            in_cw = jnp.where(sel, lo, in_cw)
            in_bw = jnp.where(sel, hi - lo, in_bw)
            lo = hi

        # --- heights edges + raw derivative gather (fused loop over k) ---
        in_ch = zeros
        in_h = zeros
        raw_d = zeros
        raw_d1 = zeros
        lo_h = bottom
        for k in range(K):
            hk = h_floor + h_scale * jnp.exp(h_ref[k, rows, :] - hmax)
            hi_h = (lo_h + hk) if k < K - 1 else top     # exact top edge on last bin
            eq = bidx == k
            in_ch = jnp.where(eq, lo_h, in_ch)
            in_h = jnp.where(eq, hi_h - lo_h, in_h)
            if k >= 1:
                raw_d = jnp.where(eq, d_ref[k - 1, rows, :], raw_d)
            if k <= K - 2:
                raw_d1 = jnp.where(eq, d_ref[k, rows, :], raw_d1)
            lo_h = hi_h

        # softplus only on the 2 gathered derivative values; boundary rows are
        # the compile-time constant (linear tails).
        in_d = jnp.where(bidx == 0, d_boundary, min_derivative + _softplus(raw_d))
        in_d1 = jnp.where(bidx == K - 1, d_boundary, min_derivative + _softplus(raw_d1))

        # --- rational-quadratic transform ---
        inv_bw = 1.0 / in_bw
        in_delta = in_h * inv_bw
        theta = (xc - in_cw) * inv_bw
        om_theta = 1.0 - theta
        t1mt = theta * om_theta
        theta2 = theta * theta
        numerator = in_h * (in_delta * theta2 + in_d * t1mt)
        denominator = in_delta + (in_d + in_d1 - 2.0 * in_delta) * t1mt
        inv_den = 1.0 / denominator
        spline_out = in_ch + numerator * inv_den
        deriv_num = (in_delta * in_delta) * (
            in_d1 * theta2 + 2.0 * in_delta * t1mt + in_d * om_theta * om_theta)
        lad = jnp.log(deriv_num * (inv_den * inv_den))

        out_ref[rows, :] = jnp.where(inside, spline_out, x)
        lad_ref[rows, :] = jnp.where(inside, lad, 0.0)

    if n_chunks == 1:
        process(slice(None))
    else:
        # Loop over 8-row chunks inside the block: bounds the live set to a few
        # (8, 256) arrays (~2 vregs each) so no spilling, while the HBM block
        # stays large enough (~1.7 MB) to amortize grid-step overhead.
        def body(c, carry):
            r0 = pl.multiple_of(c * row_block, row_block)
            process(pl.ds(r0, row_block))
            return carry
        lax.fori_loop(0, n_chunks, body, 0, unroll=False)


@functools.partial(jax.jit, static_argnames=(
    "tail_bound", "num_bins", "min_bin_width", "min_bin_height", "min_derivative"))
def _rqs_forward_impl(x, w_, h_, d_, *, tail_bound, num_bins,
                      min_bin_width, min_bin_height, min_derivative):
    K = num_bins
    orig_shape = x.shape
    N = int(np.prod(orig_shape)) if len(orig_shape) else 1

    C = _LANES
    Rtot = -(-N // C)                 # rows of the dense 2D element view
    Npad = Rtot * C
    pad = Npad - N                    # <= C-1 elements; fuses with the transpose under jit

    xf = x.reshape(N).astype(jnp.float32)
    # TODO(synk): producing the parameters upstream already in (K, N) layout
    # would remove these transpose copies entirely.
    wf = jnp.transpose(w_.reshape(N, K).astype(jnp.float32))        # (K, N)
    hf = jnp.transpose(h_.reshape(N, K).astype(jnp.float32))        # (K, N)
    df = jnp.transpose(d_.reshape(N, K - 1).astype(jnp.float32))    # (K-1, N)
    if pad:
        xf = jnp.pad(xf, (0, pad))
        wf = jnp.pad(wf, ((0, 0), (0, pad)))
        hf = jnp.pad(hf, ((0, 0), (0, pad)))
        df = jnp.pad(df, ((0, 0), (0, pad)))
    x2 = xf.reshape(Rtot, C)
    w3 = wf.reshape(K, Rtot, C)
    h3 = hf.reshape(K, Rtot, C)
    d3 = df.reshape(K - 1, Rtot, C)

    # Row tile: up to 64 rows (16K elems, ~1.7 MB input DMA per step); keep at
    # least 2 grid steps for mid/large inputs so both v7x TensorCores get work.
    if Rtot <= 7:
        TR = Rtot
    elif Rtot < 16:
        TR = 8
    else:
        TR = min(64, ((Rtot + 15) // 16) * 8)
    RB = 8 if TR % 8 == 0 else TR      # in-kernel row-chunk size
    n_chunks = TR // RB
    n_tiles = -(-Rtot // TR)           # ragged last block handled by Pallas

    # linear-tail boundary derivative: min_d + softplus(log(expm1(1 - min_d))) == 1
    deriv_pad_const = float(np.log(np.expm1(1.0 - min_derivative)))
    d_boundary = float(min_derivative + np.logaddexp(0.0, deriv_pad_const))

    kernel = functools.partial(
        _rqs_fwd_kernel, num_bins=K, row_block=RB, n_chunks=n_chunks,
        tail_bound=float(tail_bound), min_bin_width=float(min_bin_width),
        min_bin_height=float(min_bin_height), min_derivative=float(min_derivative),
        d_boundary=d_boundary)

    out, lad = pl.pallas_call(
        kernel,
        out_shape=(jax.ShapeDtypeStruct((Rtot, C), jnp.float32),
                   jax.ShapeDtypeStruct((Rtot, C), jnp.float32)),
        grid=(n_tiles,),
        in_specs=[
            pl.BlockSpec((TR, C), lambda i: (i, 0)),
            pl.BlockSpec((K, TR, C), lambda i: (0, i, 0)),
            pl.BlockSpec((K, TR, C), lambda i: (0, i, 0)),
            pl.BlockSpec((K - 1, TR, C), lambda i: (0, i, 0)),
        ],
        out_specs=(
            pl.BlockSpec((TR, C), lambda i: (i, 0)),
            pl.BlockSpec((TR, C), lambda i: (i, 0)),
        ),
        compiler_params=pltpu.CompilerParams(
            dimension_semantics=("parallel",)),
    )(x2, w3, h3, d3)

    out = out.reshape(Npad)[:N].reshape(orig_shape)
    lad = lad.reshape(Npad)[:N].reshape(orig_shape)
    return out, lad


def rqs_forward(x, w_, h_, d_, *, tail_bound, num_bins,
                min_bin_width=1e-3, min_bin_height=1e-3, min_derivative=1e-3):
    """x: (...,); w_/h_: x.shape + (K,); d_: x.shape + (K-1,).
    Returns (outputs, logabsdet), each shaped like x."""
    return _rqs_forward_impl(
        x, w_, h_, d_, tail_bound=float(tail_bound), num_bins=int(num_bins),
        min_bin_width=float(min_bin_width), min_bin_height=float(min_bin_height),
        min_derivative=float(min_derivative))


class RQS:
    """Pallas mirror of flows/spline.py::RQS (forward direction)."""

    def __init__(self, tail_bound, num_bins, min_bin_width=1e-3,
                 min_bin_height=1e-3, min_derivative=1e-3):
        self.conditional = False
        self.num_bins = num_bins
        self.min_bin_width = min_bin_width
        self.min_bin_height = min_bin_height
        self.min_derivative = min_derivative
        self.tail_bound = tail_bound

    def forward(self, x, w_, h_, d_):
        return rqs_forward(
            x, w_, h_, d_, tail_bound=self.tail_bound, num_bins=self.num_bins,
            min_bin_width=self.min_bin_width, min_bin_height=self.min_bin_height,
            min_derivative=self.min_derivative)

    # TODO(synk): inverse direction (solve quadratic for root) not implemented.


def _softplus_ref(v):
    return jnp.maximum(v, 0.0) + jnp.log(1.0 + jnp.exp(-jnp.abs(v)))


def _reference(x, w, h, d, tail_bound, num_bins, min_bin_width,
               min_bin_height, min_derivative):
    """Pure-JAX port of nflows' unconstrained_rational_quadratic_spline (forward)."""
    K = num_bins
    left, right, bottom, top = -tail_bound, tail_bound, -tail_bound, tail_bound
    x = x.astype(jnp.float32)
    inside = (x >= left) & (x <= right)

    const = float(np.log(np.expm1(1.0 - min_derivative)))
    pad = jnp.full(x.shape + (1,), const, jnp.float32)
    d_pad = jnp.concatenate([pad, d.astype(jnp.float32), pad], axis=-1)

    widths = jax.nn.softmax(w.astype(jnp.float32), axis=-1)
    widths = min_bin_width + (1 - min_bin_width * K) * widths
    cumwidths = jnp.concatenate(
        [jnp.zeros(x.shape + (1,), jnp.float32), jnp.cumsum(widths, -1)], -1)
    cumwidths = (right - left) * cumwidths + left
    cumwidths = cumwidths.at[..., 0].set(left).at[..., -1].set(right)
    bw = cumwidths[..., 1:] - cumwidths[..., :-1]

    derivs = min_derivative + _softplus_ref(d_pad)

    heights = jax.nn.softmax(h.astype(jnp.float32), axis=-1)
    heights = min_bin_height + (1 - min_bin_height * K) * heights
    cumheights = jnp.concatenate(
        [jnp.zeros(x.shape + (1,), jnp.float32), jnp.cumsum(heights, -1)], -1)
    cumheights = (top - bottom) * cumheights + bottom
    cumheights = cumheights.at[..., 0].set(bottom).at[..., -1].set(top)
    bh = cumheights[..., 1:] - cumheights[..., :-1]

    x_in = jnp.clip(x, left, right)
    locs = cumwidths.at[..., -1].add(_SEARCHSORTED_EPS)
    bidx = jnp.sum((x_in[..., None] >= locs).astype(jnp.int32), -1) - 1
    bidx = jnp.clip(bidx, 0, K - 1)

    take = lambda q: jnp.take_along_axis(q, bidx[..., None], -1)[..., 0]
    in_cw, in_bw, in_ch = take(cumwidths[..., :-1]), take(bw), take(cumheights[..., :-1])
    delta = bh / bw
    in_delta, in_d, in_d1, in_h = take(delta), take(derivs[..., :-1]), take(derivs[..., 1:]), take(bh)

    theta = (x_in - in_cw) / in_bw
    t1 = theta * (1 - theta)
    num = in_h * (in_delta * theta ** 2 + in_d * t1)
    den = in_delta + (in_d + in_d1 - 2 * in_delta) * t1
    out = in_ch + num / den
    dn = in_delta ** 2 * (in_d1 * theta ** 2 + 2 * in_delta * t1 + in_d * (1 - theta) ** 2)
    lad = jnp.log(dn) - 2 * jnp.log(den)
    return jnp.where(inside, out, x), jnp.where(inside, lad, 0.0)


if __name__ == "__main__":
    key = jax.random.PRNGKey(0)
    B, D, K = 2, 64, 8
    tail_bound = 3.0
    k1, k2, k3, k4 = jax.random.split(key, 4)
    x = 2.0 * jax.random.normal(k1, (B, D), jnp.float32)      # some points outside the tails
    w_ = jax.random.normal(k2, (B, D, K), jnp.float32)
    h_ = jax.random.normal(k3, (B, D, K), jnp.float32)
    d_ = jax.random.normal(k4, (B, D, K - 1), jnp.float32)

    rqs = RQS(tail_bound=tail_bound, num_bins=K)
    out, logabsdet = rqs.forward(x, w_, h_, d_)
    jax.block_until_ready((out, logabsdet))

    ref_out, ref_lad = _reference(x, w_, h_, d_, tail_bound, K, 1e-3, 1e-3, 1e-3)
    assert out.shape == x.shape and logabsdet.shape == x.shape
    np.testing.assert_allclose(np.asarray(out), np.asarray(ref_out), rtol=1e-4, atol=1e-4)
    np.testing.assert_allclose(np.asarray(logabsdet), np.asarray(ref_lad), rtol=1e-4, atol=1e-4)

    print("KERNEL_OK")
</pallas_src>

<mosaic_0001>
module attributes {stable_mosaic.version = 11 : i64} {
  func.func @_rqs_fwd_kernel(%arg0: i32, %arg1: memref<1x256xf32, #tpu.memory_space<vmem>>, %arg2: memref<8x1x256xf32, #tpu.memory_space<vmem>>, %arg3: memref<8x1x256xf32, #tpu.memory_space<vmem>>, %arg4: memref<7x1x256xf32, #tpu.memory_space<vmem>>, %arg5: memref<1x256xf32, #tpu.memory_space<vmem>>, %arg6: memref<1x256xf32, #tpu.memory_space<vmem>>) attributes {dimension_semantics = [#tpu.dimension_semantics<parallel>], iteration_bounds = array<i64: 1>, scalar_prefetch = 0 : i64, scratch_operands = 0 : i64, tpu.core_type = #tpu.core_type<tc>, window_params = [{transform_indices = @transform_0, window_bounds = array<i64: 1, 256>}, {transform_indices = @transform_1, window_bounds = array<i64: 8, 1, 256>}, {transform_indices = @transform_2, window_bounds = array<i64: 8, 1, 256>}, {transform_indices = @transform_3, window_bounds = array<i64: 7, 1, 256>}, {transform_indices = @transform_4, window_bounds = array<i64: 1, 256>}, {transform_indices = @transform_5, window_bounds = array<i64: 1, 256>}]} {
    %c0 = arith.constant 0 : index
    %c0_0 = arith.constant 0 : index
    %0 = vector.load %arg1[%c0, %c0_0] : memref<1x256xf32, #tpu.memory_space<vmem>>, vector<1x256xf32>
    %cst = arith.constant -3.000000e+00 : f32
    %1 = vector.broadcast %cst : f32 to vector<1x256xf32>
    %2 = arith.cmpf oge, %0, %1 : vector<1x256xf32>
    %cst_1 = arith.constant 3.000000e+00 : f32
    %3 = vector.broadcast %cst_1 : f32 to vector<1x256xf32>
    %4 = arith.cmpf ole, %0, %3 : vector<1x256xf32>
    %5 = arith.andi %2, %4 : vector<1x256xi1>
    %cst_2 = arith.constant -3.000000e+00 : f32
    %cst_3 = arith.constant 3.000000e+00 : f32
    %6 = vector.broadcast %cst_2 : f32 to vector<1x256xf32>
    %7 = arith.maximumf %6, %0 : vector<1x256xf32>
    %8 = vector.broadcast %cst_3 : f32 to vector<1x256xf32>
    %9 = arith.minimumf %8, %7 : vector<1x256xf32>
    %c0_4 = arith.constant 0 : index
    %c0_5 = arith.constant 0 : index
    %c0_6 = arith.constant 0 : index
    %10 = vector.load %arg2[%c0_4, %c0_5, %c0_6] : memref<8x1x256xf32, #tpu.memory_space<vmem>>, vector<1x1x256xf32>
    %11 = vector.shape_cast %10 : vector<1x1x256xf32> to vector<1x256xf32>
    %c0_7 = arith.constant 0 : index
    %c0_8 = arith.constant 0 : index
    %c0_9 = arith.constant 0 : index
    %12 = vector.load %arg3[%c0_7, %c0_8, %c0_9] : memref<8x1x256xf32, #tpu.memory_space<vmem>>, vector<1x1x256xf32>
    %13 = vector.shape_cast %12 : vector<1x1x256xf32> to vector<1x256xf32>
    %c1 = arith.constant 1 : index
    %c0_10 = arith.constant 0 : index
    %c0_11 = arith.constant 0 : index
    %14 = vector.load %arg2[%c1, %c0_10, %c0_11] : memref<8x1x256xf32, #tpu.memory_space<vmem>>, vector<1x1x256xf32>
    %15 = vector.shape_cast %14 : vector<1x1x256xf32> to vector<1x256xf32>
    %16 = arith.maximumf %11, %15 : vector<1x256xf32>
    %c1_12 = arith.constant 1 : index
    %c0_13 = arith.constant 0 : index
    %c0_14 = arith.constant 0 : index
    %17 = vector.load %arg3[%c1_12, %c0_13, %c0_14] : memref<8x1x256xf32, #tpu.memory_space<vmem>>, vector<1x1x256xf32>
    %18 = vector.shape_cast %17 : vector<1x1x256xf32> to vector<1x256xf32>
    %19 = arith.maximumf %13, %18 : vector<1x256xf32>
    %c2 = arith.constant 2 : index
    %c0_15 = arith.constant 0 : index
    %c0_16 = arith.constant 0 : index
    %20 = vector.load %arg2[%c2, %c0_15, %c0_16] : memref<8x1x256xf32, #tpu.memory_space<vmem>>, vector<1x1x256xf32>
    %21 = vector.shape_cast %20 : vector<1x1x256xf32> to vector<1x256xf32>
    %22 = arith.maximumf %16, %21 : vector<1x256xf32>
    %c2_17 = arith.constant 2 : index
    %c0_18 = arith.constant 0 : index
    %c0_19 = arith.constant 0 : index
    %23 = vector.load %arg3[%c2_17, %c0_18, %c0_19] : memref<8x1x256xf32, #tpu.memory_space<vmem>>, vector<1x1x256xf32>
    %24 = vector.shape_cast %23 : vector<1x1x256xf32> to vector<1x256xf32>
    %25 = arith.maximumf %19, %24 : vector<1x256xf32>
    %c3 = arith.constant 3 : index
    %c0_20 = arith.constant 0 : index
    %c0_21 = arith.constant 0 : index
    %26 = vector.load %arg2[%c3, %c0_20, %c0_21] : memref<8x1x256xf32, #tpu.memory_space<vmem>>, vector<1x1x256xf32>
    %27 = vector.shape_cast %26 : vector<1x1x256xf32> to vector<1x256xf32>
    %28 = arith.maximumf %22, %27 : vector<1x256xf32>
    %c3_22 = arith.constant 3 : index
    %c0_23 = arith.constant 0 : index
    %c0_24 = arith.constant 0 : index
    %29 = vector.load %arg3[%c3_22, %c0_23, %c0_24] : memref<8x1x256xf32, #tpu.memory_space<vmem>>, vector<1x1x256xf32>
    %30 = vector.shape_cast %29 : vector<1x1x256xf32> to vector<1x256xf32>
    %31 = arith.maximumf %25, %30 : vector<1x256xf32>
    %c4 = arith.constant 4 : index
    %c0_25 = arith.constant 0 : index
    %c0_26 = arith.constant 0 : index
    %32 = vector.load %arg2[%c4, %c0_25, %c0_26] : memref<8x1x256xf32, #tpu.memory_space<vmem>>, vector<1x1x256xf32>
    %33 = vector.shape_cast %32 : vector<1x1x256xf32> to vector<1x256xf32>
    %34 = arith.maximumf %28, %33 : vector<1x256xf32>
    %c4_27 = arith.constant 4 : index
    %c0_28 = arith.constant 0 : index
    %c0_29 = arith.constant 0 : index
    %35 = vector.load %arg3[%c4_27, %c0_28, %c0_29] : memref<8x1x256xf32, #tpu.memory_space<vmem>>, vector<1x1x256xf32>
    %36 = vector.shape_cast %35 : vector<1x1x256xf32> to vector<1x256xf32>
    %37 = arith.maximumf %31, %36 : vector<1x256xf32>
    %c5 = arith.constant 5 : index
    %c0_30 = arith.constant 0 : index
    %c0_31 = arith.constant 0 : index
    %38 = vector.load %arg2[%c5, %c0_30, %c0_31] : memref<8x1x256xf32, #tpu.memory_space<vmem>>, vector<1x1x256xf32>
    %39 = vector.shape_cast %38 : vector<1x1x256xf32> to vector<1x256xf32>
    %40 = arith.maximumf %34, %39 : vector<1x256xf32>
    %c5_32 = arith.constant 5 : index
    %c0_33 = arith.constant 0 : index
    %c0_34 = arith.constant 0 : index
    %41 = vector.load %arg3[%c5_32, %c0_33, %c0_34] : memref<8x1x256xf32, #tpu.memory_space<vmem>>, vector<1x1x256xf32>
    %42 = vector.shape_cast %41 : vector<1x1x256xf32> to vector<1x256xf32>
    %43 = arith.maximumf %37, %42 : vector<1x256xf32>
    %c6 = arith.constant 6 : index
    %c0_35 = arith.constant 0 : index
    %c0_36 = arith.constant 0 : index
    %44 = vector.load %arg2[%c6, %c0_35, %c0_36] : memref<8x1x256xf32, #tpu.memory_space<vmem>>, vector<1x1x256xf32>
    %45 = vector.shape_cast %44 : vector<1x1x256xf32> to vector<1x256xf32>
    %46 = arith.maximumf %40, %45 : vector<1x256xf32>
    %c6_37 = arith.constant 6 : index
    %c0_38 = arith.constant 0 : index
    %c0_39 = arith.constant 0 : index
    %47 = vector.load %arg3[%c6_37, %c0_38, %c0_39] : memref<8x1x256xf32, #tpu.memory_space<vmem>>, vector<1x1x256xf32>
    %48 = vector.shape_cast %47 : vector<1x1x256xf32> to vector<1x256xf32>
    %49 = arith.maximumf %43, %48 : vector<1x256xf32>
    %c7 = arith.constant 7 : index
    %c0_40 = arith.constant 0 : index
    %c0_41 = arith.constant 0 : index
    %50 = vector.load %arg2[%c7, %c0_40, %c0_41] : memref<8x1x256xf32, #tpu.memory_space<vmem>>, vector<1x1x256xf32>
    %51 = vector.shape_cast %50 : vector<1x1x256xf32> to vector<1x256xf32>
    %52 = arith.maximumf %46, %51 : vector<1x256xf32>
    %c7_42 = arith.constant 7 : index
    %c0_43 = arith.constant 0 : index
    %c0_44 = arith.constant 0 : index
    %53 = vector.load %arg3[%c7_42, %c0_43, %c0_44] : memref<8x1x256xf32, #tpu.memory_space<vmem>>, vector<1x1x256xf32>
    %54 = vector.shape_cast %53 : vector<1x1x256xf32> to vector<1x256xf32>
    %55 = arith.maximumf %49, %54 : vector<1x256xf32>
    %c0_45 = arith.constant 0 : index
    %c0_46 = arith.constant 0 : index
    %c0_47 = arith.constant 0 : index
    %56 = vector.load %arg2[%c0_45, %c0_46, %c0_47] : memref<8x1x256xf32, #tpu.memory_space<vmem>>, vector<1x1x256xf32>
    %57 = vector.shape_cast %56 : vector<1x1x256xf32> to vector<1x256xf32>
    %58 = arith.subf %57, %52 : vector<1x256xf32>
    %59 = math.exp %58 : vector<1x256xf32>
    %c0_48 = arith.constant 0 : index
    %c0_49 = arith.constant 0 : index
    %c0_50 = arith.constant 0 : index
    %60 = vector.load %arg3[%c0_48, %c0_49, %c0_50] : memref<8x1x256xf32, #tpu.memory_space<vmem>>, vector<1x1x256xf32>
    %61 = vector.shape_cast %60 : vector<1x1x256xf32> to vector<1x256xf32>
    %62 = arith.subf %61, %55 : vector<1x256xf32>
    %63 = math.exp %62 : vector<1x256xf32>
    %c1_51 = arith.constant 1 : index
    %c0_52 = arith.constant 0 : index
    %c0_53 = arith.constant 0 : index
    %64 = vector.load %arg2[%c1_51, %c0_52, %c0_53] : memref<8x1x256xf32, #tpu.memory_space<vmem>>, vector<1x1x256xf32>
    %65 = vector.shape_cast %64 : vector<1x1x256xf32> to vector<1x256xf32>
    %66 = arith.subf %65, %52 : vector<1x256xf32>
    %67 = math.exp %66 : vector<1x256xf32>
    %68 = arith.addf %59, %67 : vector<1x256xf32>
    %c1_54 = arith.constant 1 : index
    %c0_55 = arith.constant 0 : index
    %c0_56 = arith.constant 0 : index
    %69 = vector.load %arg3[%c1_54, %c0_55, %c0_56] : memref<8x1x256xf32, #tpu.memory_space<vmem>>, vector<1x1x256xf32>
    %70 = vector.shape_cast %69 : vector<1x1x256xf32> to vector<1x256xf32>
    %71 = arith.subf %70, %55 : vector<1x256xf32>
    %72 = math.exp %71 : vector<1x256xf32>
    %73 = arith.addf %63, %72 : vector<1x256xf32>
    %c2_57 = arith.constant 2 : index
    %c0_58 = arith.constant 0 : index
    %c0_59 = arith.constant 0 : index
    %74 = vector.load %arg2[%c2_57, %c0_58, %c0_59] : memref<8x1x256xf32, #tpu.memory_space<vmem>>, vector<1x1x256xf32>
    %75 = vector.shape_cast %74 : vector<1x1x256xf32> to vector<1x256xf32>
    %76 = arith.subf %75, %52 : vector<1x256xf32>
    %77 = math.exp %76 : vector<1x256xf32>
    %78 = arith.addf %68, %77 : vector<1x256xf32>
    %c2_60 = arith.constant 2 : index
    %c0_61 = arith.constant 0 : index
    %c0_62 = arith.constant 0 : index
    %79 = vector.load %arg3[%c2_60, %c0_61, %c0_62] : memref<8x1x256xf32, #tpu.memory_space<vmem>>, vector<1x1x256xf32>
    %80 = vector.shape_cast %79 : vector<1x1x256xf32> to vector<1x256xf32>
    %81 = arith.subf %80, %55 : vector<1x256xf32>
    %82 = math.exp %81 : vector<1x256xf32>
    %83 = arith.addf %73, %82 : vector<1x256xf32>
    %c3_63 = arith.constant 3 : index
    %c0_64 = arith.constant 0 : index
    %c0_65 = arith.constant 0 : index
    %84 = vector.load %arg2[%c3_63, %c0_64, %c0_65] : memref<8x1x256xf32, #tpu.memory_space<vmem>>, vector<1x1x256xf32>
    %85 = vector.shape_cast %84 : vector<1x1x256xf32> to vector<1x256xf32>
    %86 = arith.subf %85, %52 : vector<1x256xf32>
    %87 = math.exp %86 : vector<1x256xf32>
    %88 = arith.addf %78, %87 : vector<1x256xf32>
    %c3_66 = arith.constant 3 : index
    %c0_67 = arith.constant 0 : index
    %c0_68 = arith.constant 0 : index
    %89 = vector.load %arg3[%c3_66, %c0_67, %c0_68] : memref<8x1x256xf32, #tpu.memory_space<vmem>>, vector<1x1x256xf32>
    %90 = vector.shape_cast %89 : vector<1x1x256xf32> to vector<1x256xf32>
    %91 = arith.subf %90, %55 : vector<1x256xf32>
    %92 = math.exp %91 : vector<1x256xf32>
    %93 = arith.addf %83, %92 : vector<1x256xf32>
    %c4_69 = arith.constant 4 : index
    %c0_70 = arith.constant 0 : index
    %c0_71 = arith.constant 0 : index
    %94 = vector.load %arg2[%c4_69, %c0_70, %c0_71] : memref<8x1x256xf32, #tpu.memory_space<vmem>>, vector<1x1x256xf32>
    %95 = vector.shape_cast %94 : vector<1x1x256xf32> to vector<1x256xf32>
    %96 = arith.subf %95, %52 : vector<1x256xf32>
    %97 = math.exp %96 : vector<1x256xf32>
    %98 = arith.addf %88, %97 : vector<1x256xf32>
    %c4_72 = arith.constant 4 : index
    %c0_73 = arith.constant 0 : index
    %c0_74 = arith.constant 0 : index
    %99 = vector.load %arg3[%c4_72, %c0_73, %c0_74] : memref<8x1x256xf32, #tpu.memory_space<vmem>>, vector<1x1x256xf32>
    %100 = vector.shape_cast %99 : vector<1x1x256xf32> to vector<1x256xf32>
    %101 = arith.subf %100, %55 : vector<1x256xf32>
    %102 = math.exp %101 : vector<1x256xf32>
    %103 = arith.addf %93, %102 : vector<1x256xf32>
    %c5_75 = arith.constant 5 : index
    %c0_76 = arith.constant 0 : index
    %c0_77 = arith.constant 0 : index
    %104 = vector.load %arg2[%c5_75, %c0_76, %c0_77] : memref<8x1x256xf32, #tpu.memory_space<vmem>>, vector<1x1x256xf32>
    %105 = vector.shape_cast %104 : vector<1x1x256xf32> to vector<1x256xf32>
    %106 = arith.subf %105, %52 : vector<1x256xf32>
    %107 = math.exp %106 : vector<1x256xf32>
    %108 = arith.addf %98, %107 : vector<1x256xf32>
    %c5_78 = arith.constant 5 : index
    %c0_79 = arith.constant 0 : index
    %c0_80 = arith.constant 0 : index
    %109 = vector.load %arg3[%c5_78, %c0_79, %c0_80] : memref<8x1x256xf32, #tpu.memory_space<vmem>>, vector<1x1x256xf32>
    %110 = vector.shape_cast %109 : vector<1x1x256xf32> to vector<1x256xf32>
    %111 = arith.subf %110, %55 : vector<1x256xf32>
    %112 = math.exp %111 : vector<1x256xf32>
    %113 = arith.addf %103, %112 : vector<1x256xf32>
    %c6_81 = arith.constant 6 : index
    %c0_82 = arith.constant 0 : index
    %c0_83 = arith.constant 0 : index
    %114 = vector.load %arg2[%c6_81, %c0_82, %c0_83] : memref<8x1x256xf32, #tpu.memory_space<vmem>>, vector<1x1x256xf32>
    %115 = vector.shape_cast %114 : vector<1x1x256xf32> to vector<1x256xf32>
    %116 = arith.subf %115, %52 : vector<1x256xf32>
    %117 = math.exp %116 : vector<1x256xf32>
    %118 = arith.addf %108, %117 : vector<1x256xf32>
    %c6_84 = arith.constant 6 : index
    %c0_85 = arith.constant 0 : index
    %c0_86 = arith.constant 0 : index
    %119 = vector.load %arg3[%c6_84, %c0_85, %c0_86] : memref<8x1x256xf32, #tpu.memory_space<vmem>>, vector<1x1x256xf32>
    %120 = vector.shape_cast %119 : vector<1x1x256xf32> to vector<1x256xf32>
    %121 = arith.subf %120, %55 : vector<1x256xf32>
    %122 = math.exp %121 : vector<1x256xf32>
    %123 = arith.addf %113, %122 : vector<1x256xf32>
    %c7_87 = arith.constant 7 : index
    %c0_88 = arith.constant 0 : index
    %c0_89 = arith.constant 0 : index
    %124 = vector.load %arg2[%c7_87, %c0_88, %c0_89] : memref<8x1x256xf32, #tpu.memory_space<vmem>>, vector<1x1x256xf32>
    %125 = vector.shape_cast %124 : vector<1x1x256xf32> to vector<1x256xf32>
    %126 = arith.subf %125, %52 : vector<1x256xf32>
    %127 = math.exp %126 : vector<1x256xf32>
    %128 = arith.addf %118, %127 : vector<1x256xf32>
    %c7_90 = arith.constant 7 : index
    %c0_91 = arith.constant 0 : index
    %c0_92 = arith.constant 0 : index
    %129 = vector.load %arg3[%c7_90, %c0_91, %c0_92] : memref<8x1x256xf32, #tpu.memory_space<vmem>>, vector<1x1x256xf32>
    %130 = vector.shape_cast %129 : vector<1x1x256xf32> to vector<1x256xf32>
    %131 = arith.subf %130, %55 : vector<1x256xf32>
    %132 = math.exp %131 : vector<1x256xf32>
    %133 = arith.addf %123, %132 : vector<1x256xf32>
    %cst_93 = arith.constant 5.952000e+00 : f32
    %134 = vector.broadcast %cst_93 : f32 to vector<1x256xf32>
    %135 = arith.divf %134, %128 : vector<1x256xf32>
    %cst_94 = arith.constant 5.952000e+00 : f32
    %136 = vector.broadcast %cst_94 : f32 to vector<1x256xf32>
    %137 = arith.divf %136, %133 : vector<1x256xf32>
    %cst_95 = arith.constant 0.000000e+00 : f32
    %138 = vector.broadcast %cst_95 : f32 to vector<1x256xf32>
    %c0_i32 = arith.constant 0 : i32
    %139 = vector.broadcast %c0_i32 : i32 to vector<1x256xi32>
    %c0_96 = arith.constant 0 : index
    %c0_97 = arith.constant 0 : index
    %c0_98 = arith.constant 0 : index
    %140 = vector.load %arg2[%c0_96, %c0_97, %c0_98] : memref<8x1x256xf32, #tpu.memory_space<vmem>>, vector<1x1x256xf32>
    %141 = vector.shape_cast %140 : vector<1x1x256xf32> to vector<1x256xf32>
    %142 = arith.subf %141, %52 : vector<1x256xf32>
    %143 = math.exp %142 : vector<1x256xf32>
    %144 = arith.mulf %135, %143 : vector<1x256xf32>
    %cst_99 = arith.constant 6.000000e-03 : f32
    %145 = vector.broadcast %cst_99 : f32 to vector<1x256xf32>
    %146 = arith.addf %145, %144 : vector<1x256xf32>
    %cst_100 = arith.constant -3.000000e+00 : f32
    %147 = vector.broadcast %cst_100 : f32 to vector<1x256xf32>
    %148 = arith.addf %147, %146 : vector<1x256xf32>
    %149 = arith.cmpf oge, %9, %148 : vector<1x256xf32>
    %cst_101 = arith.constant dense<true> : vector<1x256xi1>
    %150 = arith.xori %149, %cst_101 : vector<1x256xi1>
    %c1_i32 = arith.constant 1 : i32
    %c0_i32_102 = arith.constant 0 : i32
    %151 = vector.broadcast %c1_i32 : i32 to vector<1x256xi32>
    %152 = vector.broadcast %c0_i32_102 : i32 to vector<1x256xi32>
    %153 = arith.select %149, %151, %152 : vector<1x256xi1>, vector<1x256xi32>
    %154 = arith.addi %139, %153 : vector<1x256xi32>
    %cst_103 = arith.constant -3.000000e+00 : f32
    %155 = vector.broadcast %cst_103 : f32 to vector<1x256xf32>
    %156 = arith.select %150, %155, %138 : vector<1x256xi1>, vector<1x256xf32>
    %cst_104 = arith.constant -3.000000e+00 : f32
    %157 = vector.broadcast %cst_104 : f32 to vector<1x256xf32>
    %158 = arith.subf %148, %157 : vector<1x256xf32>
    %159 = arith.select %150, %158, %138 : vector<1x256xi1>, vector<1x256xf32>
    %c1_105 = arith.constant 1 : index
    %c0_106 = arith.constant 0 : index
    %c0_107 = arith.constant 0 : index
    %160 = vector.load %arg2[%c1_105, %c0_106, %c0_107] : memref<8x1x256xf32, #tpu.memory_space<vmem>>, vector<1x1x256xf32>
    %161 = vector.shape_cast %160 : vector<1x1x256xf32> to vector<1x256xf32>
    %162 = arith.subf %161, %52 : vector<1x256xf32>
    %163 = math.exp %162 : vector<1x256xf32>
    %164 = arith.mulf %135, %163 : vector<1x256xf32>
    %cst_108 = arith.constant 6.000000e-03 : f32
    %165 = vector.broadcast %cst_108 : f32 to vector<1x256xf32>
    %166 = arith.addf %165, %164 : vector<1x256xf32>
    %167 = arith.addf %148, %166 : vector<1x256xf32>
    %168 = arith.cmpf oge, %9, %167 : vector<1x256xf32>
    %cst_109 = arith.constant dense<true> : vector<1x256xi1>
    %169 = arith.xori %168, %cst_109 : vector<1x256xi1>
    %170 = arith.andi %149, %169 : vector<1x256xi1>
    %c1_i32_110 = arith.constant 1 : i32
    %c0_i32_111 = arith.constant 0 : i32
    %171 = vector.broadcast %c1_i32_110 : i32 to vector<1x256xi32>
    %172 = vector.broadcast %c0_i32_111 : i32 to vector<1x256xi32>
    %173 = arith.select %168, %171, %172 : vector<1x256xi1>, vector<1x256xi32>
    %174 = arith.addi %154, %173 : vector<1x256xi32>
    %175 = arith.select %170, %148, %156 : vector<1x256xi1>, vector<1x256xf32>
    %176 = arith.subf %167, %148 : vector<1x256xf32>
    %177 = arith.select %170, %176, %159 : vector<1x256xi1>, vector<1x256xf32>
    %c2_112 = arith.constant 2 : index
    %c0_113 = arith.constant 0 : index
    %c0_114 = arith.constant 0 : index
    %178 = vector.load %arg2[%c2_112, %c0_113, %c0_114] : memref<8x1x256xf32, #tpu.memory_space<vmem>>, vector<1x1x256xf32>
    %179 = vector.shape_cast %178 : vector<1x1x256xf32> to vector<1x256xf32>
    %180 = arith.subf %179, %52 : vector<1x256xf32>
    %181 = math.exp %180 : vector<1x256xf32>
    %182 = arith.mulf %135, %181 : vector<1x256xf32>
    %cst_115 = arith.constant 6.000000e-03 : f32
    %183 = vector.broadcast %cst_115 : f32 to vector<1x256xf32>
    %184 = arith.addf %183, %182 : vector<1x256xf32>
    %185 = arith.addf %167, %184 : vector<1x256xf32>
    %186 = arith.cmpf oge, %9, %185 : vector<1x256xf32>
    %cst_116 = arith.constant dense<true> : vector<1x256xi1>
    %187 = arith.xori %186, %cst_116 : vector<1x256xi1>
    %188 = arith.andi %168, %187 : vector<1x256xi1>
    %c1_i32_117 = arith.constant 1 : i32
    %c0_i32_118 = arith.constant 0 : i32
    %189 = vector.broadcast %c1_i32_117 : i32 to vector<1x256xi32>
    %190 = vector.broadcast %c0_i32_118 : i32 to vector<1x256xi32>
    %191 = arith.select %186, %189, %190 : vector<1x256xi1>, vector<1x256xi32>
    %192 = arith.addi %174, %191 : vector<1x256xi32>
    %193 = arith.select %188, %167, %175 : vector<1x256xi1>, vector<1x256xf32>
    %194 = arith.subf %185, %167 : vector<1x256xf32>
    %195 = arith.select %188, %194, %177 : vector<1x256xi1>, vector<1x256xf32>
    %c3_119 = arith.constant 3 : index
    %c0_120 = arith.constant 0 : index
    %c0_121 = arith.constant 0 : index
    %196 = vector.load %arg2[%c3_119, %c0_120, %c0_121] : memref<8x1x256xf32, #tpu.memory_space<vmem>>, vector<1x1x256xf32>
    %197 = vector.shape_cast %196 : vector<1x1x256xf32> to vector<1x256xf32>
    %198 = arith.subf %197, %52 : vector<1x256xf32>
    %199 = math.exp %198 : vector<1x256xf32>
    %200 = arith.mulf %135, %199 : vector<1x256xf32>
    %cst_122 = arith.constant 6.000000e-03 : f32
    %201 = vector.broadcast %cst_122 : f32 to vector<1x256xf32>
    %202 = arith.addf %201, %200 : vector<1x256xf32>
    %203 = arith.addf %185, %202 : vector<1x256xf32>
    %204 = arith.cmpf oge, %9, %203 : vector<1x256xf32>
    %cst_123 = arith.constant dense<true> : vector<1x256xi1>
    %205 = arith.xori %204, %cst_123 : vector<1x256xi1>
    %206 = arith.andi %186, %205 : vector<1x256xi1>
    %c1_i32_124 = arith.constant 1 : i32
    %c0_i32_125 = arith.constant 0 : i32
    %207 = vector.broadcast %c1_i32_124 : i32 to vector<1x256xi32>
    %208 = vector.broadcast %c0_i32_125 : i32 to vector<1x256xi32>
    %209 = arith.select %204, %207, %208 : vector<1x256xi1>, vector<1x256xi32>
    %210 = arith.addi %192, %209 : vector<1x256xi32>
    %211 = arith.select %206, %185, %193 : vector<1x256xi1>, vector<1x256xf32>
    %212 = arith.subf %203, %185 : vector<1x256xf32>
    %213 = arith.select %206, %212, %195 : vector<1x256xi1>, vector<1x256xf32>
    %c4_126 = arith.constant 4 : index
    %c0_127 = arith.constant 0 : index
    %c0_128 = arith.constant 0 : index
    %214 = vector.load %arg2[%c4_126, %c0_127, %c0_128] : memref<8x1x256xf32, #tpu.memory_space<vmem>>, vector<1x1x256xf32>
    %215 = vector.shape_cast %214 : vector<1x1x256xf32> to vector<1x256xf32>
    %216 = arith.subf %215, %52 : vector<1x256xf32>
    %217 = math.exp %216 : vector<1x256xf32>
    %218 = arith.mulf %135, %217 : vector<1x256xf32>
    %cst_129 = arith.constant 6.000000e-03 : f32
    %219 = vector.broadcast %cst_129 : f32 to vector<1x256xf32>
    %220 = arith.addf %219, %218 : vector<1x256xf32>
    %221 = arith.addf %203, %220 : vector<1x256xf32>
    %222 = arith.cmpf oge, %9, %221 : vector<1x256xf32>
    %cst_130 = arith.constant dense<true> : vector<1x256xi1>
    %223 = arith.xori %222, %cst_130 : vector<1x256xi1>
    %224 = arith.andi %204, %223 : vector<1x256xi1>
    %c1_i32_131 = arith.constant 1 : i32
    %c0_i32_132 = arith.constant 0 : i32
    %225 = vector.broadcast %c1_i32_131 : i32 to vector<1x256xi32>
    %226 = vector.broadcast %c0_i32_132 : i32 to vector<1x256xi32>
    %227 = arith.select %222, %225, %226 : vector<1x256xi1>, vector<1x256xi32>
    %228 = arith.addi %210, %227 : vector<1x256xi32>
    %229 = arith.select %224, %203, %211 : vector<1x256xi1>, vector<1x256xf32>
    %230 = arith.subf %221, %203 : vector<1x256xf32>
    %231 = arith.select %224, %230, %213 : vector<1x256xi1>, vector<1x256xf32>
    %c5_133 = arith.constant 5 : index
    %c0_134 = arith.constant 0 : index
    %c0_135 = arith.constant 0 : index
    %232 = vector.load %arg2[%c5_133, %c0_134, %c0_135] : memref<8x1x256xf32, #tpu.memory_space<vmem>>, vector<1x1x256xf32>
    %233 = vector.shape_cast %232 : vector<1x1x256xf32> to vector<1x256xf32>
    %234 = arith.subf %233, %52 : vector<1x256xf32>
    %235 = math.exp %234 : vector<1x256xf32>
    %236 = arith.mulf %135, %235 : vector<1x256xf32>
    %cst_136 = arith.constant 6.000000e-03 : f32
    %237 = vector.broadcast %cst_136 : f32 to vector<1x256xf32>
    %238 = arith.addf %237, %236 : vector<1x256xf32>
    %239 = arith.addf %221, %238 : vector<1x256xf32>
    %240 = arith.cmpf oge, %9, %239 : vector<1x256xf32>
    %cst_137 = arith.constant dense<true> : vector<1x256xi1>
    %241 = arith.xori %240, %cst_137 : vector<1x256xi1>
    %242 = arith.andi %222, %241 : vector<1x256xi1>
    %c1_i32_138 = arith.constant 1 : i32
    %c0_i32_139 = arith.constant 0 : i32
    %243 = vector.broadcast %c1_i32_138 : i32 to vector<1x256xi32>
    %244 = vector.broadcast %c0_i32_139 : i32 to vector<1x256xi32>
    %245 = arith.select %240, %243, %244 : vector<1x256xi1>, vector<1x256xi32>
    %246 = arith.addi %228, %245 : vector<1x256xi32>
    %247 = arith.select %242, %221, %229 : vector<1x256xi1>, vector<1x256xf32>
    %248 = arith.subf %239, %221 : vector<1x256xf32>
    %249 = arith.select %242, %248, %231 : vector<1x256xi1>, vector<1x256xf32>
    %c6_140 = arith.constant 6 : index
    %c0_141 = arith.constant 0 : index
    %c0_142 = arith.constant 0 : index
    %250 = vector.load %arg2[%c6_140, %c0_141, %c0_142] : memref<8x1x256xf32, #tpu.memory_space<vmem>>, vector<1x1x256xf32>
    %251 = vector.shape_cast %250 : vector<1x1x256xf32> to vector<1x256xf32>
    %252 = arith.subf %251, %52 : vector<1x256xf32>
    %253 = math.exp %252 : vector<1x256xf32>
    %254 = arith.mulf %135, %253 : vector<1x256xf32>
    %cst_143 = arith.constant 6.000000e-03 : f32
    %255 = vector.broadcast %cst_143 : f32 to vector<1x256xf32>
    %256 = arith.addf %255, %254 : vector<1x256xf32>
    %257 = arith.addf %239, %256 : vector<1x256xf32>
    %258 = arith.cmpf oge, %9, %257 : vector<1x256xf32>
    %cst_144 = arith.constant dense<true> : vector<1x256xi1>
    %259 = arith.xori %258, %cst_144 : vector<1x256xi1>
    %260 = arith.andi %240, %259 : vector<1x256xi1>
    %c1_i32_145 = arith.constant 1 : i32
    %c0_i32_146 = arith.constant 0 : i32
    %261 = vector.broadcast %c1_i32_145 : i32 to vector<1x256xi32>
    %262 = vector.broadcast %c0_i32_146 : i32 to vector<1x256xi32>
    %263 = arith.select %258, %261, %262 : vector<1x256xi1>, vector<1x256xi32>
    %264 = arith.addi %246, %263 : vector<1x256xi32>
    %265 = arith.select %260, %239, %247 : vector<1x256xi1>, vector<1x256xf32>
    %266 = arith.subf %257, %239 : vector<1x256xf32>
    %267 = arith.select %260, %266, %249 : vector<1x256xi1>, vector<1x256xf32>
    %268 = arith.select %258, %257, %265 : vector<1x256xi1>, vector<1x256xf32>
    %cst_147 = arith.constant 3.000000e+00 : f32
    %269 = vector.broadcast %cst_147 : f32 to vector<1x256xf32>
    %270 = arith.subf %269, %257 : vector<1x256xf32>
    %271 = arith.select %258, %270, %267 : vector<1x256xi1>, vector<1x256xf32>
    %c0_148 = arith.constant 0 : index
    %c0_149 = arith.constant 0 : index
    %c0_150 = arith.constant 0 : index
    %272 = vector.load %arg3[%c0_148, %c0_149, %c0_150] : memref<8x1x256xf32, #tpu.memory_space<vmem>>, vector<1x1x256xf32>
    %273 = vector.shape_cast %272 : vector<1x1x256xf32> to vector<1x256xf32>
    %274 = arith.subf %273, %55 : vector<1x256xf32>
    %275 = math.exp %274 : vector<1x256xf32>
    %276 = arith.mulf %137, %275 : vector<1x256xf32>
    %cst_151 = arith.constant 6.000000e-03 : f32
    %277 = vector.broadcast %cst_151 : f32 to vector<1x256xf32>
    %278 = arith.addf %277, %276 : vector<1x256xf32>
    %cst_152 = arith.constant -3.000000e+00 : f32
    %279 = vector.broadcast %cst_152 : f32 to vector<1x256xf32>
    %280 = arith.addf %279, %278 : vector<1x256xf32>
    %c0_i32_153 = arith.constant 0 : i32
    %281 = vector.broadcast %c0_i32_153 : i32 to vector<1x256xi32>
    %282 = arith.cmpi eq, %264, %281 : vector<1x256xi32>
    %cst_154 = arith.constant -3.000000e+00 : f32
    %283 = vector.broadcast %cst_154 : f32 to vector<1x256xf32>
    %284 = arith.select %282, %283, %138 : vector<1x256xi1>, vector<1x256xf32>
    %cst_155 = arith.constant -3.000000e+00 : f32
    %285 = vector.broadcast %cst_155 : f32 to vector<1x256xf32>
    %286 = arith.subf %280, %285 : vector<1x256xf32>
    %287 = arith.select %282, %286, %138 : vector<1x256xi1>, vector<1x256xf32>
    %c0_156 = arith.constant 0 : index
    %c0_157 = arith.constant 0 : index
    %c0_158 = arith.constant 0 : index
    %288 = vector.load %arg4[%c0_156, %c0_157, %c0_158] : memref<7x1x256xf32, #tpu.memory_space<vmem>>, vector<1x1x256xf32>
    %289 = vector.shape_cast %288 : vector<1x1x256xf32> to vector<1x256xf32>
    %290 = arith.select %282, %289, %138 : vector<1x256xi1>, vector<1x256xf32>
    %c1_159 = arith.constant 1 : index
    %c0_160 = arith.constant 0 : index
    %c0_161 = arith.constant 0 : index
    %291 = vector.load %arg3[%c1_159, %c0_160, %c0_161] : memref<8x1x256xf32, #tpu.memory_space<vmem>>, vector<1x1x256xf32>
    %292 = vector.shape_cast %291 : vector<1x1x256xf32> to vector<1x256xf32>
    %293 = arith.subf %292, %55 : vector<1x256xf32>
    %294 = math.exp %293 : vector<1x256xf32>
    %295 = arith.mulf %137, %294 : vector<1x256xf32>
    %cst_162 = arith.constant 6.000000e-03 : f32
    %296 = vector.broadcast %cst_162 : f32 to vector<1x256xf32>
    %297 = arith.addf %296, %295 : vector<1x256xf32>
    %298 = arith.addf %280, %297 : vector<1x256xf32>
    %c1_i32_163 = arith.constant 1 : i32
    %299 = vector.broadcast %c1_i32_163 : i32 to vector<1x256xi32>
    %300 = arith.cmpi eq, %264, %299 : vector<1x256xi32>
    %301 = arith.select %300, %280, %284 : vector<1x256xi1>, vector<1x256xf32>
    %302 = arith.subf %298, %280 : vector<1x256xf32>
    %303 = arith.select %300, %302, %287 : vector<1x256xi1>, vector<1x256xf32>
    %c0_164 = arith.constant 0 : index
    %c0_165 = arith.constant 0 : index
    %c0_166 = arith.constant 0 : index
    %304 = vector.load %arg4[%c0_164, %c0_165, %c0_166] : memref<7x1x256xf32, #tpu.memory_space<vmem>>, vector<1x1x256xf32>
    %305 = vector.shape_cast %304 : vector<1x1x256xf32> to vector<1x256xf32>
    %306 = arith.select %300, %305, %138 : vector<1x256xi1>, vector<1x256xf32>
    %c1_167 = arith.constant 1 : index
    %c0_168 = arith.constant 0 : index
    %c0_169 = arith.constant 0 : index
    %307 = vector.load %arg4[%c1_167, %c0_168, %c0_169] : memref<7x1x256xf32, #tpu.memory_space<vmem>>, vector<1x1x256xf32>
    %308 = vector.shape_cast %307 : vector<1x1x256xf32> to vector<1x256xf32>
    %309 = arith.select %300, %308, %290 : vector<1x256xi1>, vector<1x256xf32>
    %c2_170 = arith.constant 2 : index
    %c0_171 = arith.constant 0 : index
    %c0_172 = arith.constant 0 : index
    %310 = vector.load %arg3[%c2_170, %c0_171, %c0_172] : memref<8x1x256xf32, #tpu.memory_space<vmem>>, vector<1x1x256xf32>
    %311 = vector.shape_cast %310 : vector<1x1x256xf32> to vector<1x256xf32>
    %312 = arith.subf %311, %55 : vector<1x256xf32>
    %313 = math.exp %312 : vector<1x256xf32>
    %314 = arith.mulf %137, %313 : vector<1x256xf32>
    %cst_173 = arith.constant 6.000000e-03 : f32
    %315 = vector.broadcast %cst_173 : f32 to vector<1x256xf32>
    %316 = arith.addf %315, %314 : vector<1x256xf32>
    %317 = arith.addf %298, %316 : vector<1x256xf32>
    %c2_i32 = arith.constant 2 : i32
    %318 = vector.broadcast %c2_i32 : i32 to vector<1x256xi32>
    %319 = arith.cmpi eq, %264, %318 : vector<1x256xi32>
    %320 = arith.select %319, %298, %301 : vector<1x256xi1>, vector<1x256xf32>
    %321 = arith.subf %317, %298 : vector<1x256xf32>
    %322 = arith.select %319, %321, %303 : vector<1x256xi1>, vector<1x256xf32>
    %c1_174 = arith.constant 1 : index
    %c0_175 = arith.constant 0 : index
    %c0_176 = arith.constant 0 : index
    %323 = vector.load %arg4[%c1_174, %c0_175, %c0_176] : memref<7x1x256xf32, #tpu.memory_space<vmem>>, vector<1x1x256xf32>
    %324 = vector.shape_cast %323 : vector<1x1x256xf32> to vector<1x256xf32>
    %325 = arith.select %319, %324, %306 : vector<1x256xi1>, vector<1x256xf32>
    %c2_177 = arith.constant 2 : index
    %c0_178 = arith.constant 0 : index
    %c0_179 = arith.constant 0 : index
    %326 = vector.load %arg4[%c2_177, %c0_178, %c0_179] : memref<7x1x256xf32, #tpu.memory_space<vmem>>, vector<1x1x256xf32>
    %327 = vector.shape_cast %326 : vector<1x1x256xf32> to vector<1x256xf32>
    %328 = arith.select %319, %327, %309 : vector<1x256xi1>, vector<1x256xf32>
    %c3_180 = arith.constant 3 : index
    %c0_181 = arith.constant 0 : index
    %c0_182 = arith.constant 0 : index
    %329 = vector.load %arg3[%c3_180, %c0_181, %c0_182] : memref<8x1x256xf32, #tpu.memory_space<vmem>>, vector<1x1x256xf32>
    %330 = vector.shape_cast %329 : vector<1x1x256xf32> to vector<1x256xf32>
    %331 = arith.subf %330, %55 : vector<1x256xf32>
    %332 = math.exp %331 : vector<1x256xf32>
    %333 = arith.mulf %137, %332 : vector<1x256xf32>
    %cst_183 = arith.constant 6.000000e-03 : f32
    %334 = vector.broadcast %cst_183 : f32 to vector<1x256xf32>
    %335 = arith.addf %334, %333 : vector<1x256xf32>
    %336 = arith.addf %317, %335 : vector<1x256xf32>
    %c3_i32 = arith.constant 3 : i32
    %337 = vector.broadcast %c3_i32 : i32 to vector<1x256xi32>
    %338 = arith.cmpi eq, %264, %337 : vector<1x256xi32>
    %339 = arith.select %338, %317, %320 : vector<1x256xi1>, vector<1x256xf32>
    %340 = arith.subf %336, %317 : vector<1x256xf32>
    %341 = arith.select %338, %340, %322 : vector<1x256xi1>, vector<1x256xf32>
    %c2_184 = arith.constant 2 : index
    %c0_185 = arith.constant 0 : index
    %c0_186 = arith.constant 0 : index
    %342 = vector.load %arg4[%c2_184, %c0_185, %c0_186] : memref<7x1x256xf32, #tpu.memory_space<vmem>>, vector<1x1x256xf32>
    %343 = vector.shape_cast %342 : vector<1x1x256xf32> to vector<1x256xf32>
    %344 = arith.select %338, %343, %325 : vector<1x256xi1>, vector<1x256xf32>
    %c3_187 = arith.constant 3 : index
    %c0_188 = arith.constant 0 : index
    %c0_189 = arith.constant 0 : index
    %345 = vector.load %arg4[%c3_187, %c0_188, %c0_189] : memref<7x1x256xf32, #tpu.memory_space<vmem>>, vector<1x1x256xf32>
    %346 = vector.shape_cast %345 : vector<1x1x256xf32> to vector<1x256xf32>
    %347 = arith.select %338, %346, %328 : vector<1x256xi1>, vector<1x256xf32>
    %c4_190 = arith.constant 4 : index
    %c0_191 = arith.constant 0 : index
    %c0_192 = arith.constant 0 : index
    %348 = vector.load %arg3[%c4_190, %c0_191, %c0_192] : memref<8x1x256xf32, #tpu.memory_space<vmem>>, vector<1x1x256xf32>
    %349 = vector.shape_cast %348 : vector<1x1x256xf32> to vector<1x256xf32>
    %350 = arith.subf %349, %55 : vector<1x256xf32>
    %351 = math.exp %350 : vector<1x256xf32>
    %352 = arith.mulf %137, %351 : vector<1x256xf32>
    %cst_193 = arith.constant 6.000000e-03 : f32
    %353 = vector.broadcast %cst_193 : f32 to vector<1x256xf32>
    %354 = arith.addf %353, %352 : vector<1x256xf32>
    %355 = arith.addf %336, %354 : vector<1x256xf32>
    %c4_i32 = arith.constant 4 : i32
    %356 = vector.broadcast %c4_i32 : i32 to vector<1x256xi32>
    %357 = arith.cmpi eq, %264, %356 : vector<1x256xi32>
    %358 = arith.select %357, %336, %339 : vector<1x256xi1>, vector<1x256xf32>
    %359 = arith.subf %355, %336 : vector<1x256xf32>
    %360 = arith.select %357, %359, %341 : vector<1x256xi1>, vector<1x256xf32>
    %c3_194 = arith.constant 3 : index
    %c0_195 = arith.constant 0 : index
    %c0_196 = arith.constant 0 : index
    %361 = vector.load %arg4[%c3_194, %c0_195, %c0_196] : memref<7x1x256xf32, #tpu.memory_space<vmem>>, vector<1x1x256xf32>
    %362 = vector.shape_cast %361 : vector<1x1x256xf32> to vector<1x256xf32>
    %363 = arith.select %357, %362, %344 : vector<1x256xi1>, vector<1x256xf32>
    %c4_197 = arith.constant 4 : index
    %c0_198 = arith.constant 0 : index
    %c0_199 = arith.constant 0 : index
    %364 = vector.load %arg4[%c4_197, %c0_198, %c0_199] : memref<7x1x256xf32, #tpu.memory_space<vmem>>, vector<1x1x256xf32>
    %365 = vector.shape_cast %364 : vector<1x1x256xf32> to vector<1x256xf32>
    %366 = arith.select %357, %365, %347 : vector<1x256xi1>, vector<1x256xf32>
    %c5_200 = arith.constant 5 : index
    %c0_201 = arith.constant 0 : index
    %c0_202 = arith.constant 0 : index
    %367 = vector.load %arg3[%c5_200, %c0_201, %c0_202] : memref<8x1x256xf32, #tpu.memory_space<vmem>>, vector<1x1x256xf32>
    %368 = vector.shape_cast %367 : vector<1x1x256xf32> to vector<1x256xf32>
    %369 = arith.subf %368, %55 : vector<1x256xf32>
    %370 = math.exp %369 : vector<1x256xf32>
    %371 = arith.mulf %137, %370 : vector<1x256xf32>
    %cst_203 = arith.constant 6.000000e-03 : f32
    %372 = vector.broadcast %cst_203 : f32 to vector<1x256xf32>
    %373 = arith.addf %372, %371 : vector<1x256xf32>
    %374 = arith.addf %355, %373 : vector<1x256xf32>
    %c5_i32 = arith.constant 5 : i32
    %375 = vector.broadcast %c5_i32 : i32 to vector<1x256xi32>
    %376 = arith.cmpi eq, %264, %375 : vector<1x256xi32>
    %377 = arith.select %376, %355, %358 : vector<1x256xi1>, vector<1x256xf32>
    %378 = arith.subf %374, %355 : vector<1x256xf32>
    %379 = arith.select %376, %378, %360 : vector<1x256xi1>, vector<1x256xf32>
    %c4_204 = arith.constant 4 : index
    %c0_205 = arith.constant 0 : index
    %c0_206 = arith.constant 0 : index
    %380 = vector.load %arg4[%c4_204, %c0_205, %c0_206] : memref<7x1x256xf32, #tpu.memory_space<vmem>>, vector<1x1x256xf32>
    %381 = vector.shape_cast %380 : vector<1x1x256xf32> to vector<1x256xf32>
    %382 = arith.select %376, %381, %363 : vector<1x256xi1>, vector<1x256xf32>
    %c5_207 = arith.constant 5 : index
    %c0_208 = arith.constant 0 : index
    %c0_209 = arith.constant 0 : index
    %383 = vector.load %arg4[%c5_207, %c0_208, %c0_209] : memref<7x1x256xf32, #tpu.memory_space<vmem>>, vector<1x1x256xf32>
    %384 = vector.shape_cast %383 : vector<1x1x256xf32> to vector<1x256xf32>
    %385 = arith.select %376, %384, %366 : vector<1x256xi1>, vector<1x256xf32>
    %c6_210 = arith.constant 6 : index
    %c0_211 = arith.constant 0 : index
    %c0_212 = arith.constant 0 : index
    %386 = vector.load %arg3[%c6_210, %c0_211, %c0_212] : memref<8x1x256xf32, #tpu.memory_space<vmem>>, vector<1x1x256xf32>
    %387 = vector.shape_cast %386 : vector<1x1x256xf32> to vector<1x256xf32>
    %388 = arith.subf %387, %55 : vector<1x256xf32>
    %389 = math.exp %388 : vector<1x256xf32>
    %390 = arith.mulf %137, %389 : vector<1x256xf32>
    %cst_213 = arith.constant 6.000000e-03 : f32
    %391 = vector.broadcast %cst_213 : f32 to vector<1x256xf32>
    %392 = arith.addf %391, %390 : vector<1x256xf32>
    %393 = arith.addf %374, %392 : vector<1x256xf32>
    %c6_i32 = arith.constant 6 : i32
    %394 = vector.broadcast %c6_i32 : i32 to vector<1x256xi32>
    %395 = arith.cmpi eq, %264, %394 : vector<1x256xi32>
    %396 = arith.select %395, %374, %377 : vector<1x256xi1>, vector<1x256xf32>
    %397 = arith.subf %393, %374 : vector<1x256xf32>
    %398 = arith.select %395, %397, %379 : vector<1x256xi1>, vector<1x256xf32>
    %c5_214 = arith.constant 5 : index
    %c0_215 = arith.constant 0 : index
    %c0_216 = arith.constant 0 : index
    %399 = vector.load %arg4[%c5_214, %c0_215, %c0_216] : memref<7x1x256xf32, #tpu.memory_space<vmem>>, vector<1x1x256xf32>
    %400 = vector.shape_cast %399 : vector<1x1x256xf32> to vector<1x256xf32>
    %401 = arith.select %395, %400, %382 : vector<1x256xi1>, vector<1x256xf32>
    %c6_217 = arith.constant 6 : index
    %c0_218 = arith.constant 0 : index
    %c0_219 = arith.constant 0 : index
    %402 = vector.load %arg4[%c6_217, %c0_218, %c0_219] : memref<7x1x256xf32, #tpu.memory_space<vmem>>, vector<1x1x256xf32>
    %403 = vector.shape_cast %402 : vector<1x1x256xf32> to vector<1x256xf32>
    %404 = arith.select %395, %403, %385 : vector<1x256xi1>, vector<1x256xf32>
    %c7_i32 = arith.constant 7 : i32
    %405 = vector.broadcast %c7_i32 : i32 to vector<1x256xi32>
    %406 = arith.cmpi eq, %264, %405 : vector<1x256xi32>
    %407 = arith.select %406, %393, %396 : vector<1x256xi1>, vector<1x256xf32>
    %cst_220 = arith.constant 3.000000e+00 : f32
    %408 = vector.broadcast %cst_220 : f32 to vector<1x256xf32>
    %409 = arith.subf %408, %393 : vector<1x256xf32>
    %410 = arith.select %406, %409, %398 : vector<1x256xi1>, vector<1x256xf32>
    %c6_221 = arith.constant 6 : index
    %c0_222 = arith.constant 0 : index
    %c0_223 = arith.constant 0 : index
    %411 = vector.load %arg4[%c6_221, %c0_222, %c0_223] : memref<7x1x256xf32, #tpu.memory_space<vmem>>, vector<1x1x256xf32>
    %412 = vector.shape_cast %411 : vector<1x1x256xf32> to vector<1x256xf32>
    %413 = arith.select %406, %412, %401 : vector<1x256xi1>, vector<1x256xf32>
    %c0_i32_224 = arith.constant 0 : i32
    %414 = vector.broadcast %c0_i32_224 : i32 to vector<1x256xi32>
    %415 = arith.cmpi eq, %264, %414 : vector<1x256xi32>
    %cst_225 = arith.constant 0.000000e+00 : f32
    %416 = vector.broadcast %cst_225 : f32 to vector<1x256xf32>
    %417 = arith.maximumf %413, %416 : vector<1x256xf32>
    %418 = math.absf %413 : vector<1x256xf32>
    %cst_226 = arith.constant 0.000000e+00 : f32
    %419 = vector.broadcast %cst_226 : f32 to vector<1x256xf32>
    %420 = arith.subf %419, %418 : vector<1x256xf32>
    %421 = math.exp %420 : vector<1x256xf32>
    %cst_227 = arith.constant 1.000000e+00 : f32
    %422 = vector.broadcast %cst_227 : f32 to vector<1x256xf32>
    %423 = arith.addf %422, %421 : vector<1x256xf32>
    %424 = math.log %423 : vector<1x256xf32>
    %425 = arith.addf %417, %424 : vector<1x256xf32>
    %cst_228 = arith.constant 1.000000e-03 : f32
    %426 = vector.broadcast %cst_228 : f32 to vector<1x256xf32>
    %427 = arith.addf %426, %425 : vector<1x256xf32>
    %cst_229 = arith.constant 1.000000e+00 : f32
    %428 = vector.broadcast %cst_229 : f32 to vector<1x256xf32>
    %429 = arith.select %415, %428, %427 : vector<1x256xi1>, vector<1x256xf32>
    %c7_i32_230 = arith.constant 7 : i32
    %430 = vector.broadcast %c7_i32_230 : i32 to vector<1x256xi32>
    %431 = arith.cmpi eq, %264, %430 : vector<1x256xi32>
    %cst_231 = arith.constant 0.000000e+00 : f32
    %432 = vector.broadcast %cst_231 : f32 to vector<1x256xf32>
    %433 = arith.maximumf %404, %432 : vector<1x256xf32>
    %434 = math.absf %404 : vector<1x256xf32>
    %cst_232 = arith.constant 0.000000e+00 : f32
    %435 = vector.broadcast %cst_232 : f32 to vector<1x256xf32>
    %436 = arith.subf %435, %434 : vector<1x256xf32>
    %437 = math.exp %436 : vector<1x256xf32>
    %cst_233 = arith.constant 1.000000e+00 : f32
    %438 = vector.broadcast %cst_233 : f32 to vector<1x256xf32>
    %439 = arith.addf %438, %437 : vector<1x256xf32>
    %440 = math.log %439 : vector<1x256xf32>
    %441 = arith.addf %433, %440 : vector<1x256xf32>
    %cst_234 = arith.constant 1.000000e-03 : f32
    %442 = vector.broadcast %cst_234 : f32 to vector<1x256xf32>
    %443 = arith.addf %442, %441 : vector<1x256xf32>
    %cst_235 = arith.constant 1.000000e+00 : f32
    %444 = vector.broadcast %cst_235 : f32 to vector<1x256xf32>
    %445 = arith.select %431, %444, %443 : vector<1x256xi1>, vector<1x256xf32>
    %cst_236 = arith.constant 1.000000e+00 : f32
    %446 = vector.broadcast %cst_236 : f32 to vector<1x256xf32>
    %447 = arith.divf %446, %271 : vector<1x256xf32>
    %448 = arith.mulf %410, %447 : vector<1x256xf32>
    %449 = arith.subf %9, %268 : vector<1x256xf32>
    %450 = arith.mulf %449, %447 : vector<1x256xf32>
    %cst_237 = arith.constant 1.000000e+00 : f32
    %451 = vector.broadcast %cst_237 : f32 to vector<1x256xf32>
    %452 = arith.subf %451, %450 : vector<1x256xf32>
    %453 = arith.mulf %450, %452 : vector<1x256xf32>
    %454 = arith.mulf %450, %450 : vector<1x256xf32>
    %455 = arith.mulf %448, %454 : vector<1x256xf32>
    %456 = arith.mulf %429, %453 : vector<1x256xf32>
    %457 = arith.addf %455, %456 : vector<1x256xf32>
    %458 = arith.mulf %410, %457 : vector<1x256xf32>
    %459 = arith.addf %429, %445 : vector<1x256xf32>
    %cst_238 = arith.constant 2.000000e+00 : f32
    %460 = vector.broadcast %cst_238 : f32 to vector<1x256xf32>
    %461 = arith.mulf %460, %448 : vector<1x256xf32>
    %462 = arith.subf %459, %461 : vector<1x256xf32>
    %463 = arith.mulf %462, %453 : vector<1x256xf32>
    %464 = arith.addf %448, %463 : vector<1x256xf32>
    %cst_239 = arith.constant 1.000000e+00 : f32
    %465 = vector.broadcast %cst_239 : f32 to vector<1x256xf32>
    %466 = arith.divf %465, %464 : vector<1x256xf32>
    %467 = arith.mulf %458, %466 : vector<1x256xf32>
    %468 = arith.addf %407, %467 : vector<1x256xf32>
    %469 = arith.mulf %448, %448 : vector<1x256xf32>
    %470 = arith.mulf %445, %454 : vector<1x256xf32>
    %cst_240 = arith.constant 2.000000e+00 : f32
    %471 = vector.broadcast %cst_240 : f32 to vector<1x256xf32>
    %472 = arith.mulf %471, %448 : vector<1x256xf32>
    %473 = arith.mulf %472, %453 : vector<1x256xf32>
    %474 = arith.addf %470, %473 : vector<1x256xf32>
    %475 = arith.mulf %429, %452 : vector<1x256xf32>
    %476 = arith.mulf %475, %452 : vector<1x256xf32>
    %477 = arith.addf %474, %476 : vector<1x256xf32>
    %478 = arith.mulf %469, %477 : vector<1x256xf32>
    %479 = arith.mulf %466, %466 : vector<1x256xf32>
    %480 = arith.mulf %478, %479 : vector<1x256xf32>
    %481 = math.log %480 : vector<1x256xf32>
    %482 = arith.select %5, %468, %0 : vector<1x256xi1>, vector<1x256xf32>
    %c0_241 = arith.constant 0 : index
    %c0_242 = arith.constant 0 : index
    %483 = vector.load %arg5[%c0_241, %c0_242] : memref<1x256xf32, #tpu.memory_space<vmem>>, vector<1x256xf32>
    tpu.vector_store %arg5[%c0_241, %c0_242], %482 {strides = array<i32>} : memref<1x256xf32, #tpu.memory_space<vmem>>, vector<1x256xf32>,
    %cst_243 = arith.constant 0.000000e+00 : f32
    %484 = vector.broadcast %cst_243 : f32 to vector<1x256xf32>
    %485 = arith.select %5, %481, %484 : vector<1x256xi1>, vector<1x256xf32>
    %c0_244 = arith.constant 0 : index
    %c0_245 = arith.constant 0 : index
    %486 = vector.load %arg6[%c0_244, %c0_245] : memref<1x256xf32, #tpu.memory_space<vmem>>, vector<1x256xf32>
    tpu.vector_store %arg6[%c0_244, %c0_245], %485 {strides = array<i32>} : memref<1x256xf32, #tpu.memory_space<vmem>>, vector<1x256xf32>,
    return
  }
  func.func @transform_0(%arg0: i32) -> (i32, i32) {
    %c0_i32 = arith.constant 0 : i32
    %c0_i32_0 = arith.constant 0 : i32
    return %arg0, %c0_i32 : i32, i32
  }
  func.func @transform_1(%arg0: i32) -> (i32, i32, i32) {
    %c0_i32 = arith.constant 0 : i32
    %c0_i32_0 = arith.constant 0 : i32
    %c0_i32_1 = arith.constant 0 : i32
    return %c0_i32, %arg0, %c0_i32_0 : i32, i32, i32
  }
  func.func @transform_2(%arg0: i32) -> (i32, i32, i32) {
    %c0_i32 = arith.constant 0 : i32
    %c0_i32_0 = arith.constant 0 : i32
    %c0_i32_1 = arith.constant 0 : i32
    return %c0_i32, %arg0, %c0_i32_0 : i32, i32, i32
  }
  func.func @transform_3(%arg0: i32) -> (i32, i32, i32) {
    %c0_i32 = arith.constant 0 : i32
    %c0_i32_0 = arith.constant 0 : i32
    %c0_i32_1 = arith.constant 0 : i32
    return %c0_i32, %arg0, %c0_i32_0 : i32, i32, i32
  }
  func.func @transform_4(%arg0: i32) -> (i32, i32) {
    %c0_i32 = arith.constant 0 : i32
    %c0_i32_0 = arith.constant 0 : i32
    return %arg0, %c0_i32 : i32, i32
  }
  func.func @transform_5(%arg0: i32) -> (i32, i32) {
    %c0_i32 = arith.constant 0 : i32
    %c0_i32_0 = arith.constant 0 : i32
    return %arg0, %c0_i32 : i32, i32
  }
}

</mosaic_0001>

<bundles_post_ra>
// kernel: _rqs_forward_impl.1
= control target key start
LH: loop header
LB: loop body
LE: loop exit
PB: predicated region body
PF: predicated region fallthrough
CT: control target
= control target key end

     0   :  { %vm442_vm9 = vmmov 1   ;;  %s890_s1 = inlined_call_operand.vmem [shape: f32[8,1,256], index: 1, kind: input, shape index: {}]   ;;  %s891_s2 = inlined_call_operand.vmem [shape: f32[8,1,256], index: 2, kind: input, shape index: {}]   ;;  %s892_s0 = inlined_call_operand.vmem [shape: f32[1,256], index: 0, kind: input, shape index: {}]   ;;  %s893_s3 = inlined_call_operand.vmem [shape: f32[7,1,256], index: 3, kind: input, shape index: {}]   ;;  %s894_s4 = inlined_call_operand.vmem [shape: f32[1,256], index: 4, kind: output, shape index: {0}]   ;;  %s895_s5 = inlined_call_operand.vmem [shape: f32[1,256], index: 5, kind: output, shape index: {1}]  }
   0x1   :  { %v25_v0 = vld [vmem:[%s890_s1] sm:$0x3]  ;;  %v365_v2 = vld [vmem:[%s890_s1 + $0x2] sm:$0x3]  ;;  %v367_v5 = vld [vmem:[%s890_s1 + $0x4] sm:$0x3] }
   0x2   :  { %v26_v1 = vld [vmem:[%s891_s2] sm:$0x3]  ;;  %v29_v3 = vmax.f32 %v25_v0, %v365_v2  ;;  %v366_v4 = vld [vmem:[%s891_s2 + $0x2] sm:$0x3]  ;;  %v368_v7 = vld [vmem:[%s891_s2 + $0x4] sm:$0x3] }
   0x3   :  { %v32_v6 = vmax.f32 %v26_v1, %v366_v4  ;;  %v369_v8 = vld [vmem:[%s890_s1 + $0x6] sm:$0x3]  ;;  %v371_v12 = vld [vmem:[%s890_s1 + $0x8] sm:$0x3]  ;;  %v373_v16 = vld [vmem:[%s890_s1 + $0xa] sm:$0x3] }
   0x4   :  { %v35_v9 = vmax.f32 %v29_v3, %v367_v5  ;;  %v370_v10 = vld [vmem:[%s891_s2 + $0x6] sm:$0x3]  ;;  %v372_v14 = vld [vmem:[%s891_s2 + $0x8] sm:$0x3]  ;;  %v374_v18 = vld [vmem:[%s891_s2 + $0xa] sm:$0x3] }
   0x5   :  { %v38_v11 = vmax.f32 %v32_v6, %v368_v7  ;;  %v375_v20 = vld [vmem:[%s890_s1 + $0xc] sm:$0x3]  ;;  %v377_v24 = vld [vmem:[%s890_s1 + $0xe] sm:$0x3] }
   0x6   :  { %v41_v13 = vmax.f32 %v35_v9, %v369_v8  ;;  %v376_v22 = vld [vmem:[%s891_s2 + $0xc] sm:$0x3]  ;;  %v378_v26 = vld [vmem:[%s891_s2 + $0xe] sm:$0x3] }
   0x7   :  { %v44_v15 = vmax.f32 %v38_v11, %v370_v10 }
   0x8   :  { %v47_v17 = vmax.f32 %v41_v13, %v371_v12 }
   0x9   :  { %v50_v19 = vmax.f32 %v44_v15, %v372_v14 }
   0xa   :  { %v53_v21 = vmax.f32 %v47_v17, %v373_v16 }
   0xb   :  { %v56_v23 = vmax.f32 %v50_v19, %v374_v18 }
   0xc   :  { %v59_v25 = vmax.f32 %v53_v21, %v375_v20 }
   0xd   :  { %v62_v27 = vmax.f32 %v56_v23, %v376_v22 }
   0xe   :  { %v65_v28 = vmax.f32 %v59_v25, %v377_v24 }
   0xf   :  { %v68_v29 = vmax.f32 %v62_v27, %v378_v26 }
  0x10   :  { %v69_v30 = vsub.f32 %v25_v0, %v65_v28  ;;  %v75_v31 = vsub.f32 %v365_v2, %v65_v28  ;;  %v83_v32 = vsub.f32 %v367_v5, %v65_v28  ;;  %v91_v38 = vsub.f32 %v369_v8, %v65_v28 }
  0x11   :  { %v72_v33 = vsub.f32 %v26_v1, %v68_v29  ;;  %v79_v34 = vsub.f32 %v366_v4, %v68_v29  ;;  %v87_v35 = vsub.f32 %v368_v7, %v68_v29  ;;  %v95_v41 = vsub.f32 %v370_v10, %v68_v29 }
  0x12   :  { %v70_v36 = vmul.f32 1.442695, %v69_v30  ;;  %v76_v37 = vmul.f32 1.442695, %v75_v31  ;;  %v84_v42 = vmul.f32 1.442695, %v83_v32  ;;  %v99_v43 = vsub.f32 %v371_v12, %v65_v28 }
  0x13   :  { %v73_v39 = vmul.f32 1.442695, %v72_v33  ;;  %v80_v40 = vmul.f32 1.442695, %v79_v34  ;;  %v88_v44 = vmul.f32 1.442695, %v87_v35  ;;  %v103_v45 = vsub.f32 %v372_v14, %v68_v29 }
  0x14   :  { %390 = vpow2.f32 %v70_v36  ;;  %v92_v46 = vmul.f32 1.442695, %v91_v38  ;;  %v107_v47 = vsub.f32 %v373_v16, %v65_v28  ;;  %v96_v48 = vmul.f32 1.442695, %v95_v41  ;;  %v533_v31 = vld [vmem:[%s892_s0] sm:$0x3] }
  0x15   :  { %392 = vpow2.f32 %v73_v39  ;;  %v111_v49 = vsub.f32 %v374_v18, %v68_v29  ;;  %v100_v50 = vmul.f32 1.442695, %v99_v43  ;;  %v115_v51 = vsub.f32 %v375_v20, %v65_v28 }
  0x16   :  { %394 = vpow2.f32 %v76_v37  ;;  %v104_v52 = vmul.f32 1.442695, %v103_v45  ;;  %v119_v53 = vsub.f32 %v376_v22, %v68_v29  ;;  %v108_v54 = vmul.f32 1.442695, %v107_v47 }
  0x17   :  { %396 = vpow2.f32 %v80_v40  ;;  %v123_v55 = vsub.f32 %v377_v24, %v65_v28  ;;  %v112_v56 = vmul.f32 1.442695, %v111_v49  ;;  %v127_v57 = vsub.f32 %v378_v26, %v68_v29 }
  0x18   :  { %398 = vpow2.f32 %v84_v42  ;;  %v116_v58 = vmul.f32 1.442695, %v115_v51  ;;  %v120_v59 = vmul.f32 1.442695, %v119_v53  ;;  %v536_v36 = vclamps-f32 %v533_v31, 3.0 }
  0x19   :  { %400 = vpow2.f32 %v88_v44  ;;  %v124_v60 = vmul.f32 1.442695, %v123_v55  ;;  %v128_v61 = vmul.f32 1.442695, %v127_v57  ;;  %v440_v45 = vmov 0  }
  0x1a   :  { %402 = vpow2.f32 %v92_v46 }
  0x1b   :  { %404 = vpow2.f32 %v96_v48 }
  0x1c   :  { %406 = vpow2.f32 %v100_v50 }
  0x1d   :  { %408 = vpow2.f32 %v104_v52 }
  0x1e   :  { %410 = vpow2.f32 %v108_v54 }
  0x1f   :  { %412 = vpow2.f32 %v112_v56 }
  0x20   :  { %414 = vpow2.f32 %v116_v58 }
  0x21   :  { %v391_v62 = vpop.eup %390  ;;  %416 = vpow2.f32 %v120_v59 }
  0x22   :  { %v393_v63 = vpop.eup %392  ;;  %418 = vpow2.f32 %v124_v60 }
  0x23   :  { %v395_v0 = vpop.eup %394  ;;  %420 = vpow2.f32 %v128_v61 }
  0x24   :  { %v397_v1 = vpop.eup %396  ;;  %v78_v2 = vadd.f32 %v395_v0, %v391_v62 }
  0x25   :  { %v399_v3 = vpop.eup %398  ;;  %v82_v4 = vadd.f32 %v397_v1, %v393_v63 }
  0x26   :  { %v401_v5 = vpop.eup %400  ;;  %v86_v6 = vadd.f32 %v399_v3, %v78_v2 }
  0x27   :  { %v403_v7 = vpop.eup %402  ;;  %v90_v8 = vadd.f32 %v401_v5, %v82_v4 }
  0x28   :  { %v405_v9 = vpop.eup %404  ;;  %v94_v10 = vadd.f32 %v403_v7, %v86_v6 }
  0x29   :  { %v407_v11 = vpop.eup %406  ;;  %v98_v12 = vadd.f32 %v405_v9, %v90_v8 }
  0x2a   :  { %v521_v13 = vpop.eup %408  ;;  %v102_v14 = vadd.f32 %v407_v11, %v94_v10 }
  0x2b   :  { %v411_v15 = vpop.eup %410  ;;  %v106_v16 = vadd.f32 %v521_v13, %v98_v12 }
  0x2c   :  { %v524_v17 = vpop.eup %412  ;;  %v110_v18 = vadd.f32 %v411_v15, %v102_v14 }
  0x2d   :  { %v415_v19 = vpop.eup %414  ;;  %v114_v20 = vadd.f32 %v524_v17, %v106_v16 }
  0x2e   :  { %v527_v21 = vpop.eup %416  ;;  %v118_v22 = vadd.f32 %v415_v19, %v110_v18 }
  0x2f   :  { %v419_v23 = vpop.eup %418  ;;  %v122_v24 = vadd.f32 %v527_v21, %v114_v20 }
  0x30   :  { %v421_v25 = vpop.eup %420  ;;  %v126_v26 = vadd.f32 %v419_v23, %v118_v22  ;;  %v220_v22 = vld [vmem:[%s893_s3] sm:$0x3]  ;;  %v381_v23 = vld [vmem:[%s893_s3 + $0x2] sm:$0x3] }
  0x31   :  { %v130_v27 = vadd.f32 %v421_v25, %v122_v24 }
  0x32   :  { %422 = vrcp.f32 %v126_v26 }
  0x33   :  { %424 = vrcp.f32 %v130_v27 }
  0x3f   :  { %v423_v28 = vpop.eup %422 }
  0x40   :  { %v425_v29 = vpop.eup %424  ;;  %v132_v30 = vmul.f32 5.952, %v423_v28  ;;  %v441_v28 = vmov 0.0  }
  0x41   :  { %v134_v32 = vmul.f32 5.952, %v425_v29 }
  0x42   :  { %v135_v33 = vmul.f32 %v391_v62, %v132_v30  ;;  %v144_v34 = vmul.f32 %v395_v0, %v132_v30  ;;  %v155_v35 = vmul.f32 %v399_v3, %v132_v30  ;;  %v166_v41 = vmul.f32 %v403_v7, %v132_v30 }
  0x43   :  { %v213_v39 = vmul.f32 %v393_v63, %v134_v32  ;;  %v177_v44 = vmul.f32 %v407_v11, %v132_v30  ;;  %v222_v48 = vmul.f32 %v397_v1, %v134_v32  ;;  %v188_v54 = vmul.f32 %v411_v15, %v132_v30 }
  0x44   :  { %v136_v37 = vadd.f32 0.006, %v135_v33  ;;  %v145_v38 = vadd.f32 0.006, %v144_v34  ;;  %v156_v42 = vadd.f32 0.006, %v155_v35  ;;  %v233_v57 = vmul.f32 %v401_v5, %v134_v32 }
  0x45   :  { %v214_v47 = vadd.f32 0.006, %v213_v39  ;;  %v167_v49 = vadd.f32 0.006, %v166_v41  ;;  %v178_v53 = vadd.f32 0.006, %v177_v44  ;;  %v199_v61 = vmul.f32 %v415_v19, %v132_v30 }
  0x46   :  { %v538_v40 = vadd.f32 -3.0, %v136_v37  ;;  %v223_v56 = vadd.f32 0.006, %v222_v48  ;;  %v189_v62 = vadd.f32 0.006, %v188_v54  ;;  %v244_v63 = vmul.f32 %v405_v9, %v134_v32 }
  0x47   :  { %v558_v55 = vadd.f32 -3.0, %v214_v47  ;;  %v234_v3 = vadd.f32 0.006, %v233_v57  ;;  %v200_v5 = vadd.f32 0.006, %v199_v61  ;;  %v255_v11 = vmul.f32 %v521_v13, %v134_v32 }
  0x48   :  { %vm138_vm0 = vcmp.ge.f32.partialorder %v536_v36, %v538_v40  ;;  %v543_v43 = vadd.f32 %v145_v38, %v538_v40  ;;  %v245_v10 = vadd.f32 0.006, %v244_v63  ;;  %v266_v13 = vmul.f32 %v524_v17, %v134_v32  ;;  %v382_v17 = vld [vmem:[%s893_s3 + $0x4] sm:$0x3]  ;;  %v383_v37 = vld [vmem:[%s893_s3 + $0x6] sm:$0x3] }
  0x49   :  { %v140_v46 = vsel %vm138_vm0, 1, %v440_v45  ;;  %v575_v2 = vadd.f32 %v223_v56, %v558_v55  ;;  %v256_v18 = vadd.f32 0.006, %v255_v11  ;;  %v277_v24 = vmul.f32 %v527_v21, %v134_v32  ;;  %vm654_vm12 = vmxor %vm138_vm0, %vm442_vm9  ;;  %v384_v44 = vld [vmem:[%s893_s3 + $0x8] sm:$0x3] }
  0x4a   :  { %vm147_vm1 = vcmp.ge.f32.partialorder %v536_v36, %v543_v43  ;;  %v554_v51 = vadd.f32 %v156_v42, %v543_v43  ;;  %v267_v26 = vadd.f32 0.006, %v266_v13  ;;  %v379_v27 = vadd.f32 3.0, %v538_v40  ;;  %v385_v47 = vld [vmem:[%s893_s3 + $0xa] sm:$0x3] }
  0x4b   :  { %v150_v50 = vsel %vm147_vm1, 1, %v440_v45  ;;  %v586_v9 = vadd.f32 %v234_v3, %v575_v2  ;;  %vm635_vm10 = vmxor %vm147_vm1, %vm442_vm9  ;;  %v153_v33 = vsub.f32 %v543_v43, %v538_v40  ;;  %v141_v32 = vsel %vm654_vm12, -3.0, %v441_v28 }
  0x4c   :  { %v151_v52 = vadd.s32 %v150_v50, %v140_v46  ;;  %vm158_vm2 = vcmp.ge.f32.partialorder %v536_v36, %v554_v51  ;;  %v564_v59 = vadd.f32 %v167_v49, %v554_v51  ;;  %v143_v54 = vsel %vm654_vm12, %v379_v27, 0.0 }
  0x4d   :  { %v161_v58 = vsel %vm158_vm2, 1, %v440_v45  ;;  %v600_v16 = vadd.f32 %v245_v10, %v586_v9 }
  0x4e   :  { %v162_v60 = vadd.s32 %v161_v58, %v151_v52  ;;  %vm169_vm3 = vcmp.ge.f32.partialorder %v536_v36, %v564_v59  ;;  %v572_v1 = vadd.f32 %v178_v53, %v564_v59  ;;  %v386_v53 = vld [vmem:[%s893_s3 + $0xc] sm:$0x3] }
  0x4f   :  { %v172_v0 = vsel %vm169_vm3, 1, %v440_v45  ;;  %v621_v25 = vadd.f32 %v256_v18, %v600_v16  ;;  %v175_v18 = vsub.f32 %v564_v59, %v554_v51 }
  0x50   :  { %v173_v4 = vadd.s32 %v172_v0, %v162_v60  ;;  %vm180_vm4 = vcmp.ge.f32.partialorder %v536_v36, %v572_v1  ;;  %v583_v7 = vadd.f32 %v189_v62, %v572_v1  ;;  %v164_v60 = vsub.f32 %v554_v51, %v543_v43 }
  0x51   :  { %v183_v6 = vsel %vm180_vm4, 1, %v440_v45  ;;  %v671_v46 = vadd.f32 %v267_v26, %v621_v25 }
  0x52   :  { %v184_v8 = vadd.s32 %v183_v6, %v173_v4  ;;  %vm191_vm5 = vcmp.ge.f32.partialorder %v536_v36, %v583_v7  ;;  %v595_v14 = vadd.f32 %v200_v5, %v583_v7 }
  0x53   :  { %v194_v12 = vsel %vm191_vm5, 1, %v440_v45 }
  0x54   :  { %v195_v15 = vadd.s32 %v194_v12, %v184_v8  ;;  %vm202_vm6 = vcmp.ge.f32.partialorder %v536_v36, %v595_v14 }
  0x55   :  { %v205_v19 = vsel %vm202_vm6, 1, %v440_v45  ;;  %v278_v45 = vadd.f32 0.006, %v277_v24 }
  0x56   :  { %v606_v20 = vadd.s32 %v205_v19, %v195_v15 }
  0x57   :  { %v724_v0 = vadd.f32 %v278_v45, %v671_v46  ;;  %v238_v45 = vsub.f32 %v586_v9, %v575_v2 }
  0x58   :  { %vm216_vm7 = vcmp.eq.s32.totalorder %v606_v20, 0  ;;  %vm897_vm8 = vcmp.eq.s32.totalorder %v606_v20, 1  ;;  %vm896_vm11 = vcmp.eq.s32.totalorder %v606_v20, 2  ;;  %vm247_vm13 = vcmp.eq.s32.totalorder %v606_v20, 3 }
  0x59   :  { %v217_v29 = vsel %vm216_vm7, -3.0, %v441_v28  ;;  %v221_v21 = vsel %vm216_vm7, %v220_v22, 0.0  ;;  %v229_v30 = vsel %vm897_vm8, %v220_v22, 0.0  ;;  %vm899_vm14 = vcmp.eq.s32.totalorder %v606_v20, 4 }
  0x5a   :  { %v226_v34 = vsel %vm897_vm8, %v558_v55, %v217_v29  ;;  %v232_v35 = vsel %vm897_vm8, %v381_v23, %v221_v21  ;;  %v240_v41 = vsel %vm896_vm11, %v381_v23, %v229_v30  ;;  %vm898_vm15 = vcmp.eq.s32.totalorder %v606_v20, 5 }
  0x5b   :  { %v237_v39 = vsel %vm896_vm11, %v575_v2, %v226_v34  ;;  %v243_v42 = vsel %vm896_vm11, %v382_v17, %v232_v35  ;;  %vm682_vm11 = vmand %vm138_vm0, %vm635_vm10  ;;  %v251_v50 = vsel %vm247_vm13, %v382_v17, %v240_v41  ;;  %vm280_vm8 = vcmp.eq.s32.totalorder %v606_v20, 6 }
  0x5c   :  { %v248_v49 = vsel %vm247_vm13, %v586_v9, %v237_v39  ;;  %v254_v52 = vsel %vm247_vm13, %v383_v37, %v243_v42  ;;  %vm159_vm0 = vmxor %vm158_vm2, %vm442_vm9  ;;  %v262_v57 = vsel %vm899_vm14, %v383_v37, %v251_v50  ;;  %v154_v6 = vsel %vm682_vm11, %v153_v33, %v143_v54 }
  0x5d   :  { %v259_v56 = vsel %vm899_vm14, %v600_v16, %v248_v49  ;;  %v265_v58 = vsel %vm899_vm14, %v384_v44, %v254_v52  ;;  %v273_v62 = vsel %vm898_vm15, %v384_v44, %v262_v57  ;;  %vm170_vm10 = vmxor %vm169_vm3, %vm442_vm9  ;;  %vm900_vm14 = vcmp.eq.s32.totalorder %v606_v20, 7 }
  0x5e   :  { %v270_v61 = vsel %vm898_vm15, %v621_v25, %v259_v56  ;;  %v276_v63 = vsel %vm898_vm15, %v385_v47, %v265_v58  ;;  %v284_v4 = vsel %vm280_vm8, %v385_v47, %v273_v62  ;;  %vm740_vm15 = vmand %vm147_vm1, %vm159_vm0  ;;  %v186_v17 = vsub.f32 %v572_v1, %v564_v59 }
  0x5f   :  { %v281_v3 = vsel %vm280_vm8, %v671_v46, %v270_v61  ;;  %v733_v5 = vsel %vm280_vm8, %v386_v53, %v276_v63  ;;  %v753_v12 = vsel %vm900_vm14, %v386_v53, %v284_v4  ;;  %vm758_vm1 = vmand %vm158_vm2, %vm170_vm10  ;;  %v165_v22 = vsel %vm740_vm15, %v164_v60, %v154_v6 }
  0x60   :  { %v305_v10 = vand.u32 2147483647, %v733_v5  ;;  %v749_v11 = vsel %vm900_vm14, %v724_v0, %v281_v3  ;;  %v294_v13 = vand.u32 2147483647, %v753_v12  ;;  %vm181_vm0 = vmxor %vm180_vm4, %vm442_vm9  ;;  %v176_v26 = vsel %vm758_vm1, %v175_v18, %v165_v22 }
  0x61   :  { %vm192_vm2 = vmxor %vm191_vm5, %vm442_vm9  ;;  %v197_v30 = vsub.f32 %v583_v7, %v572_v1  ;;  %v208_v34 = vsub.f32 %v595_v14, %v583_v7  ;;  %v380_v35 = vadd.f32 3.0, %v558_v55  ;;  %v152_v37 = vsel %vm682_vm11, %v538_v40, %v141_v32 }
  0x62   :  { %v306_v19 = vsub.f32 0.0, %v305_v10  ;;  %v295_v23 = vsub.f32 0.0, %v294_v13  ;;  %vm782_vm10 = vmand %vm169_vm3, %vm181_vm0  ;;  %v211_v39 = vsub.f32 3.0, %v595_v14  ;;  %v227_v41 = vsub.f32 %v575_v2, %v558_v55 }
  0x63   :  { %vm789_vm14 = vmand %vm180_vm4, %vm192_vm2  ;;  %v187_v33 = vsel %vm782_vm10, %v186_v17, %v176_v26  ;;  %v163_v42 = vsel %vm740_vm15, %v543_v43, %v152_v37  ;;  %v219_v44 = vsel %vm216_vm7, %v380_v35, 0.0  ;;  %v249_v49 = vsub.f32 %v600_v16, %v586_v9 }
  0x64   :  { %v307_v24 = vmul.f32 1.442695, %v306_v19  ;;  %v296_v29 = vmul.f32 1.442695, %v295_v23  ;;  %vm203_vm3 = vmxor %vm202_vm6, %vm442_vm9  ;;  %v198_v28 = vsel %vm789_vm14, %v197_v30, %v187_v33  ;;  %v174_v47 = vsel %vm758_vm1, %v554_v51, %v163_v42 }
  0x65   :  { %vm815_vm4 = vmand %vm191_vm5, %vm203_vm3  ;;  %vm917_vm5 = vcmp.eq.s32.totalorder %v606_v20, 1  ;;  %v185_v2 = vsel %vm782_vm10, %v564_v59, %v174_v47  ;;  %vm918_vm9 = vcmp.eq.s32.totalorder %v606_v20, 2  ;;  %v260_v54 = vsub.f32 %v621_v25, %v600_v16 }
  0x66   :  { %426 = vpow2.f32 %v307_v24  ;;  %v209_v40 = vsel %vm815_vm4, %v208_v34, %v198_v28  ;;  %v228_v43 = vsel %vm917_vm5, %v227_v41, %v219_v44  ;;  %v196_v56 = vsel %vm789_vm14, %v572_v1, %v185_v2 }
  0x67   :  { %428 = vpow2.f32 %v296_v29  ;;  %v212_v55 = vsel %vm202_vm6, %v211_v39, %v209_v40  ;;  %v239_v51 = vsel %vm918_vm9, %v238_v45, %v228_v43  ;;  %v271_v59 = vsub.f32 %v671_v46, %v621_v25 }
  0x68   :  { %430 = vrcp.f32 %v212_v55  ;;  %v250_v9 = vsel %vm247_vm13, %v249_v49, %v239_v51  ;;  %v207_v57 = vsel %vm815_vm4, %v583_v7, %v196_v56  ;;  %vm919_vm11 = vcmp.eq.s32.totalorder %v606_v20, 4 }
  0x69   :  { %v261_v58 = vsel %vm919_vm11, %v260_v54, %v250_v9  ;;  %v282_v16 = vsub.f32 %v724_v0, %v671_v46  ;;  %v210_v1 = vsel %vm202_vm6, %v595_v14, %v207_v57  ;;  %vm920_vm12 = vcmp.eq.s32.totalorder %v606_v20, 5 }
  0x6a   :  { %v272_v60 = vsel %vm920_vm12, %v271_v59, %v261_v58  ;;  %v290_v25 = vsub.f32 3.0, %v724_v0  ;;  %v318_v7 = vsub.f32 %v536_v36, %v210_v1  ;;  %v304_v63 = vmax.f32 %v733_v5, 0.0 }
  0x6b   :  { %v283_v61 = vsel %vm280_vm8, %v282_v16, %v272_v60  ;;  %vm921_vm13 = vcmp.eq.s32.totalorder %v606_v20, 7  ;;  %v293_v4 = vmax.f32 %v753_v12, 0.0  ;;  %vm21_vm8 = vcmp.le.f32.partialorder %v533_v31, 3.0 }
  0x6c   :  { %v291_v46 = vsel %vm921_vm13, %v290_v25, %v283_v61  ;;  %vm922_vm6 = vmmov %vm921_vm13  ;;  %v349_v42 = vlaneseq }
  0x6e   :  { %vm351_vm15 = vcmp.lt.s32.totalorder %v349_v42, 256 }
  0x73   :  { %v427_v48 = vpop.eup %426 }
  0x74   :  { %v309_v50 = vadd.f32 1.0, %v427_v48  ;;  %v429_v52 = vpop.eup %428 }
  0x75   :  { %v298_v53 = vadd.f32 1.0, %v429_v52  ;;  %v431_v62 = vpop.eup %430 }
  0x76   :  { %432 = vlog2.f32 %v309_v50  ;;  %v319_v8 = vmul.f32 %v431_v62, %v318_v7  ;;  %v317_v0 = vmul.f32 %v431_v62, %v291_v46 }
  0x77   :  { %434 = vlog2.f32 %v298_v53 }
  0x78   :  { %v320_v19 = vsub.f32 1.0, %v319_v8  ;;  %v328_v5 = vmul.f32 2.0, %v317_v0  ;;  %v322_v26 = vmul.f32 %v319_v8, %v319_v8  ;;  %v336_v38 = vmul.f32 %v317_v0, %v317_v0 }
  0x7a   :  { %v321_v24 = vmul.f32 %v320_v19, %v319_v8  ;;  %v323_v33 = vmul.f32 %v322_v26, %v317_v0 }
  0x7c   :  { %v338_v30 = vmul.f32 %v328_v5, %v321_v24 }
  0x83   :  { %v433_v3 = vpop.eup %432 }
  0x84   :  { %v311_v14 = vmul.f32 0.6931472, %v433_v3  ;;  %v435_v6 = vpop.eup %434 }
  0x85   :  { %v300_v10 = vmul.f32 0.6931472, %v435_v6 }
  0x86   :  { %v312_v15 = vadd.f32 %v311_v14, %v304_v63 }
  0x87   :  { %v301_v18 = vadd.f32 %v300_v10, %v293_v4 }
  0x88   :  { %v313_v13 = vadd.f32 0.001, %v312_v15 }
  0x89   :  { %v302_v22 = vadd.f32 0.001, %v301_v18 }
  0x8a   :  { %v314_v36 = vsel %vm922_vm6, 1.0, %v313_v13 }
  0x8b   :  { %v303_v23 = vsel %vm216_vm7, 1.0, %v302_v22  ;;  %v337_v21 = vmul.f32 %v322_v26, %v314_v36  ;;  %vm20_vm7 = vcmp.ge.f32.partialorder %v533_v31, -3.0 }
  0x8c   :  { %v327_v17 = vadd.f32 %v314_v36, %v303_v23  ;;  %v340_v32 = vmul.f32 %v320_v19, %v303_v23  ;;  %v324_v34 = vmul.f32 %v321_v24, %v303_v23  ;;  %vm22_vm14 = vmand %vm20_vm7, %vm21_vm8 }
  0x8d   :  { %v339_v35 = vadd.f32 %v338_v30, %v337_v21 }
  0x8e   :  { %v329_v12 = vsub.f32 %v327_v17, %v328_v5  ;;  %v341_v37 = vmul.f32 %v340_v32, %v320_v19  ;;  %v325_v28 = vadd.f32 %v324_v34, %v323_v33 }
  0x90   :  { %v330_v27 = vmul.f32 %v329_v12, %v321_v24  ;;  %v342_v39 = vadd.f32 %v341_v37, %v339_v35  ;;  %v326_v41 = vmul.f32 %v325_v28, %v291_v46 }
  0x92   :  { %v331_v29 = vadd.f32 %v330_v27, %v317_v0  ;;  %v343_v20 = vmul.f32 %v342_v39, %v336_v38 }
  0x94   :  { %436 = vrcp.f32 %v331_v29 }
  0xa1   :  { %v437_v40 = vpop.eup %436 }
  0xa2   :  { %v334_v44 = vmul.f32 %v437_v40, %v326_v41  ;;  %v344_v45 = vmul.f32 %v437_v40, %v437_v40 }
  0xa4   :  { %v335_v47 = vadd.f32 %v334_v44, %v749_v11  ;;  %v345_v55 = vmul.f32 %v344_v45, %v343_v20 }
  0xa6   :  { %438 = vlog2.f32 %v345_v55  ;;  %v348_v43 = vsel %vm22_vm14, %v335_v47, %v533_v31 }
  0xa7   :  { %353 = vst.msk [vmem:[%s894_s4] sm:$0x3] %vm351_vm15, %v348_v43 }
  0xb3   :  { %v439_v48 = vpop.eup %438 }
  0xb4   :  { %v347_v49 = vmul.f32 0.6931472, %v439_v48 }
  0xb6   :  { %v354_v50 = vsel %vm22_vm14, %v347_v49, 0.0 }
  0xb7   :  { %355 = vst.msk [vmem:[%s895_s5] sm:$0x3] %vm351_vm15, %v354_v50 }

</bundles_post_ra>
